<compile_context>
chip_gen: v5e
topology: v5e:2x2
jax: 0.10.0
libtpu: 0.0.40
codegen_flags: <defaults>
</compile_context>

<pallas_src>
import functools

import jax
import jax.numpy as jnp
import numpy as np
from jax.experimental import pallas as pl
from jax.experimental.pallas import tpu as pltpu

BN_EPS = 1e-5


def _pool_hidden_kernel(rel_ref, hid_ref, nbr_ref, wef_ref, w1b_ref, sh1_ref,
                        w2_ref, sh2_ref, out_ref, *, num_ped):
    """One grid step = S sequences; R = S*N*N (target, neighbour) pair rows.

    Pair row r = j*SN + s*N + i (neighbour-major):
      rel_ref[r]  = clip(pos[s,j] - pos[s,i]) / (nh/2)   (precomputed, f32)
      hidden part = hid[s,j] @ w1b_fold                  (one-hot expansion)
    so the final max over neighbours j is a tree of contiguous-slab maxima and
    the output store is one full, sublane-dense block.
    """
    n = num_ped
    sn = hid_ref.shape[0]                      # S * N pedestrian rows

    # --- layer 1, hidden contribution -----------------------------------------
    # Computed once per neighbour row (SN rows), then expanded to the R pair
    # rows with a one-hot bf16 MXU matmul (no sublane gathers / reshapes).
    # Note: hid_part is rounded to bf16 for the 0/1 expansion; the folded
    # shift stays f32 so rounding does not compound.
    hid_part = jnp.dot(hid_ref[...], w1b_ref[...],
                       preferred_element_type=jnp.float32)               # (SN, M)
    hid_part = jnp.dot(nbr_ref[...], hid_part.astype(nbr_ref.dtype),
                       preferred_element_type=jnp.float32)               # (R, M)

    # --- layer 1, spatial-embedding contribution -------------------------------
    # rel already clipped/normalised on the host; embedding weight, its bias,
    # layer-1 bias and BN are all folded into wef_fold / shift1.
    emb_part = jnp.dot(rel_ref[...].astype(wef_ref.dtype), wef_ref[...],
                       preferred_element_type=jnp.float32)               # (R, M)

    h1 = jnp.maximum(hid_part + emb_part + sh1_ref[...], 0.0)            # (R, M)

    # --- layer 2: Linear(M, B) (+ folded BN) + ReLU -----------------------------
    z2 = jnp.dot(h1.astype(w2_ref.dtype), w2_ref[...],
                 preferred_element_type=jnp.float32) + sh2_ref[...]
    h2 = jnp.maximum(z2, 0.0)                                            # (R, B)

    # --- max-pool over neighbours j: pairwise tree over contiguous slabs -------
    slabs = [h2[j * sn:(j + 1) * sn] for j in range(n)]
    while len(slabs) > 1:
        nxt = [jnp.maximum(slabs[k], slabs[k + 1])
               for k in range(0, len(slabs) - 1, 2)]
        if len(slabs) % 2:
            nxt.append(slabs[-1])
        slabs = nxt
    out_ref[...] = slabs[0].astype(out_ref.dtype)                        # (SN, B)


def _num_tensorcores():
    """Best-effort TensorCore-per-device count (v7x=2, v5e/v6e=1). Defaults to 1."""
    try:
        info = pltpu.get_tpu_info()
        for attr in ("num_cores", "num_tensorcores", "num_cores_per_chip",
                     "cores_per_chip", "tensorcores_per_chip"):
            v = getattr(info, attr, None)
            if isinstance(v, int) and 0 < v <= 8:
                return v
    except Exception:
        pass
    try:
        v = getattr(jax.devices()[0], "num_cores", None)
        if isinstance(v, int) and 0 < v <= 8:
            return v
    except Exception:
        pass
    return 1


def _pick_seqs_per_block(num_seqs, num_ped, num_cores, pooling_dim, h_dim,
                         m_dim, b_dim, vmem_budget_bytes=10 * 1024 * 1024,
                         max_pair_rows=4096, max_sn=128):
    """Largest divisor S of num_seqs such that:
      * S*N is a multiple of 8 (or S == num_seqs -> full-array block, always legal),
      * SN <= max_sn (keeps the one-hot expansion from dominating MXU cost),
      * the per-block VMEM footprint stays well inside every generation's
        default scoped-VMEM limit (v7x has only 64 MiB physical),
      * the grid stays a multiple of the TensorCore count when >1 (megacore).
    Single-TC chips therefore get grid=1 / the largest block (R multiple of 256
    feeds the v6e/v7x 256x256 MXU better); dual-TC chips keep >=2 grid steps."""

    def block_vmem_bytes(s):
        sn = s * num_ped
        rows = sn * num_ped
        pad = lambda x: -(-x // 128) * 128          # lane padding
        b = 0
        b += 2 * rows * pad(pooling_dim) * 4        # rel block, f32, double-buffered
        b += 2 * sn * pad(h_dim) * 2                # hid block, bf16
        b += 2 * rows * pad(sn) * 2                 # one-hot nbr, bf16 (worst case 2 bufs)
        b += 2 * sn * pad(b_dim) * 4                # output block, f32
        b += 4 * rows * pad(m_dim) * 4              # f32 (R, M) intermediates
        b += rows * pad(b_dim) * 4                  # (R, B) intermediate
        return b

    best = None
    for s in range(1, num_seqs + 1):
        if num_seqs % s:
            continue
        sn = s * num_ped
        if sn % 8 and s != num_seqs:
            continue
        if sn > max_sn:
            continue
        rows = sn * num_ped
        if rows > max_pair_rows:
            continue
        if block_vmem_bytes(s) > vmem_budget_bytes:
            continue
        g = num_seqs // s
        if num_cores > 1 and g % num_cores:
            continue
        best = s
    if best is None:   # fall back: smallest legal block, ignore the core constraint
        for s in range(1, num_seqs + 1):
            if num_seqs % s == 0 and ((s * num_ped) % 8 == 0 or s == num_seqs):
                best = s
                break
    return best


def pool_hidden_net_pallas(h_states, end_pos, num_ped, params,
                           neighborhood_size=2.0, seqs_per_block=None,
                           num_cores=None):
    """params = (we, be, w1, b1, s1, t1, w2, b2, s2, t2).

    we: (P, E), be: (1, E)         spatial_embedding (x @ we + be)
    w1: (E+H, M), b1: (1, M)       mlp_pre_pool layer 1 Linear
    s1, t1: (1, M)                 eval-mode BatchNorm1d folded to scale/shift
    w2: (M, B), b2/s2/t2: (1, B)   mlp_pre_pool layer 2 Linear + folded BN
    """
    we, be, w1, b1, s1, t1, w2, b2, s2, t2 = params
    _, batch, h_dim = h_states.shape
    assert batch % num_ped == 0, "all sequences must have num_ped pedestrians"
    num_seqs = batch // num_ped
    p = end_pos.shape[1]
    e = we.shape[1]
    m = w1.shape[1]
    bdim = w2.shape[1]
    nh = neighborhood_size / 2.0

    if num_cores is None:
        num_cores = _num_tensorcores()
    if seqs_per_block is None:
        seqs_per_block = _pick_seqs_per_block(num_seqs, num_ped, num_cores,
                                              p, h_dim, m, bdim)
    assert num_seqs % seqs_per_block == 0
    grid = num_seqs // seqs_per_block
    sn = seqs_per_block * num_ped            # pedestrian rows per block
    rows = sn * num_ped                      # (target, neighbour) pair rows per block

    # ---- host-side folding ----------------------------------------------------
    # Spatial embedding (+bias), layer biases and eval-mode BN scale/shift are
    # folded into the bf16 weights plus one f32 shift per layer.
    w1a, w1b = w1[:e], w1[e:]
    s1f = s1.astype(jnp.float32)
    s2f = s2.astype(jnp.float32)
    wef_bf = ((we @ w1a) * s1f).astype(jnp.bfloat16)            # (P, M)
    w1b_bf = (w1b * s1f).astype(jnp.bfloat16)                   # (H, M)
    shift1 = ((b1 + be @ w1a) * s1f + t1).astype(jnp.float32)   # (1, M), f32
    w2_bf = (w2 * s2f).astype(jnp.bfloat16)                     # (M, B)
    shift2 = (b2 * s2f + t2).astype(jnp.float32)                # (1, B), f32

    hid2 = h_states.reshape(-1, h_dim).astype(jnp.bfloat16)     # (batch, H)

    # ---- pairwise relative positions, precomputed in f32 by XLA ---------------
    # Pair row (g, j, s, i): rel = pos[g,s,j] - pos[g,s,i], clipped to +-nh and
    # normalised by nh (exactly the PyTorch clamp + divide).  Layout matches the
    # neighbour-major pair rows of each grid block.
    pos4 = end_pos.astype(jnp.float32).reshape(grid, seqs_per_block, num_ped, p)
    nbr_pos = jnp.transpose(pos4, (0, 2, 1, 3))[:, :, :, None, :]   # (G,Nj,S,1,P)
    tgt_pos = pos4[:, None, :, :, :]                                # (G,1,S,Ni,P)
    rel_flat = (jnp.clip(nbr_pos - tgt_pos, -nh, nh) / nh).reshape(-1, p)

    # ---- constant one-hot neighbour-expansion matrix for one block ------------
    # Pair row r = j*SN + s*N + i needs the hidden contribution of neighbour
    # q = s*N + j.  Gather-by-matmul: no sublane reshapes / gathers in-kernel.
    nbr = np.zeros((rows, sn), np.float32)
    for j in range(num_ped):
        for s in range(seqs_per_block):
            base = j * sn + s * num_ped
            nbr[base:base + num_ped, s * num_ped + j] = 1.0
    nbr = jnp.asarray(nbr, jnp.bfloat16)

    kernel = functools.partial(_pool_hidden_kernel, num_ped=num_ped)

    r_total = batch * num_ped
    cost = pl.CostEstimate(
        flops=2 * (batch * h_dim * m            # hid @ w1b_fold
                   + r_total * sn * m           # one-hot neighbour expansion
                   + r_total * p * m            # rel @ wef_fold
                   + r_total * m * bdim),       # layer-2 matmul
        transcendentals=0,
        bytes_accessed=(rel_flat.size * 4 + hid2.size * 2 + nbr.size * 2
                        + wef_bf.size * 2 + w1b_bf.size * 2 + w2_bf.size * 2
                        + shift1.size * 4 + shift2.size * 4 + batch * bdim * 4),
    )

    args = (rel_flat, hid2, nbr, wef_bf, w1b_bf, shift1, w2_bf, shift2)

    def build(single_buffer_consts):
        def const(a):
            # Constant-index operands are only DMA'd once; single-buffer them to
            # halve their VMEM residency (most valuable on v7x's 64 MiB VMEM).
            if single_buffer_consts:
                return pl.BlockSpec(a.shape, lambda g: (0,) * a.ndim,
                                    pipeline_mode=pl.Buffered(1))
            return pl.BlockSpec(a.shape, lambda g: (0,) * a.ndim)

        return pl.pallas_call(
            kernel,
            out_shape=jax.ShapeDtypeStruct((batch, bdim), jnp.float32),
            grid_spec=pltpu.PrefetchScalarGridSpec(
                num_scalar_prefetch=0,
                grid=(grid,),
                in_specs=[
                    pl.BlockSpec((rows, p), lambda g: (g, 0)),      # rel pairs
                    pl.BlockSpec((sn, h_dim), lambda g: (g, 0)),    # hidden states
                    const(nbr), const(wef_bf), const(w1b_bf), const(shift1),
                    const(w2_bf), const(shift2),
                ],
                out_specs=pl.BlockSpec((sn, bdim), lambda g: (g, 0)),
            ),
            compiler_params=pltpu.CompilerParams(
                dimension_semantics=("parallel",)),
            cost_estimate=cost,
        )

    try:
        out = jax.block_until_ready(build(True)(*args))
    except Exception:
        # Fallback path if pl.Buffered / pipeline_mode is unavailable.
        out = jax.block_until_ready(build(False)(*args))
    return out


def reference_forward(h_states, seq_start_end, end_pos,
                      we, be, w1, b1, s1, t1, w2, b2, s2, t2,
                      neighborhood_size=2.0):
    """Pure-JAX mirror of the PyTorch forward (eval-mode BN folded into s,t)."""
    h_dim = h_states.shape[-1]
    h = h_states.reshape(-1, h_dim)
    nh = neighborhood_size / 2.0
    outs = []
    for (start, end) in seq_start_end:
        n = end - start
        ch = h[start:end]
        cp = end_pos[start:end]
        p1 = jnp.tile(cp, (n, 1))               # R1,R2,...,R1,R2,...
        p2 = jnp.repeat(cp, n, axis=0)          # R1,R1,...,R2,R2,...
        rel = jnp.clip(p1 - p2, -nh, nh) / nh
        emb = rel @ we + be
        hid1 = jnp.tile(ch, (n, 1))
        x = jnp.concatenate([emb, hid1], axis=1)
        a1 = jnp.maximum((x @ w1 + b1) * s1 + t1, 0.0)
        a2 = jnp.maximum((a1 @ w2 + b2) * s2 + t2, 0.0)
        outs.append(a2.reshape(n, n, -1).max(axis=1))
    return jnp.concatenate(outs, axis=0)


if __name__ == "__main__":
    # Small module hyperparameters consistent with PoolHiddenNet.__init__
    embedding_dim = 64
    h_dim = 64
    mlp_dim = 32                      # -> hidden layer = mlp_dim * 8 = 256
    bottleneck_dim = 128
    pooling_dim = 2
    neighborhood_size = 2.0
    hidden_mlp = mlp_dim * 8

    num_ped = 4
    num_seqs = 16
    batch = num_ped * num_seqs
    seq_start_end = [(k * num_ped, (k + 1) * num_ped) for k in range(num_seqs)]

    ks = jax.random.split(jax.random.PRNGKey(0), 16)

    # spatial_embedding = nn.Linear(pooling_dim, embedding_dim)
    we = jax.random.normal(ks[0], (pooling_dim, embedding_dim), jnp.float32) * 0.5
    be = jax.random.normal(ks[1], (1, embedding_dim), jnp.float32) * 0.1

    # mlp_pre_pool layer 1: Linear(E+H, mlp_dim*8) + BatchNorm1d + ReLU
    w1 = jax.random.normal(ks[2], (embedding_dim + h_dim, hidden_mlp),
                           jnp.float32) / jnp.sqrt(embedding_dim + h_dim)
    b1 = jax.random.normal(ks[3], (1, hidden_mlp), jnp.float32) * 0.1
    g1 = 1.0 + 0.1 * jax.random.normal(ks[4], (1, hidden_mlp), jnp.float32)
    bt1 = 0.1 * jax.random.normal(ks[5], (1, hidden_mlp), jnp.float32)
    rm1 = 0.1 * jax.random.normal(ks[6], (1, hidden_mlp), jnp.float32)
    rv1 = 0.5 + jax.random.uniform(ks[7], (1, hidden_mlp), jnp.float32)

    # mlp_pre_pool layer 2: Linear(mlp_dim*8, bottleneck_dim) + BatchNorm1d + ReLU
    w2 = jax.random.normal(ks[8], (hidden_mlp, bottleneck_dim),
                           jnp.float32) / jnp.sqrt(hidden_mlp)
    b2 = jax.random.normal(ks[9], (1, bottleneck_dim), jnp.float32) * 0.1
    g2 = 1.0 + 0.1 * jax.random.normal(ks[10], (1, bottleneck_dim), jnp.float32)
    bt2 = 0.1 * jax.random.normal(ks[11], (1, bottleneck_dim), jnp.float32)
    rm2 = 0.1 * jax.random.normal(ks[12], (1, bottleneck_dim), jnp.float32)
    rv2 = 0.5 + jax.random.uniform(ks[13], (1, bottleneck_dim), jnp.float32)

    # Fold eval-mode BatchNorm1d into per-feature scale/shift.
    s1 = g1 / jnp.sqrt(rv1 + BN_EPS)
    t1 = bt1 - rm1 * s1
    s2 = g2 / jnp.sqrt(rv2 + BN_EPS)
    t2 = bt2 - rm2 * s2

    # Inputs
    h_states = jax.random.normal(ks[14], (1, batch, h_dim), jnp.float32)
    end_pos = 2.0 * jax.random.normal(ks[15], (batch, pooling_dim), jnp.float32)

    params = (we, be, w1, b1, s1, t1, w2, b2, s2, t2)
    pool_h = pool_hidden_net_pallas(h_states, end_pos, num_ped, params,
                                    neighborhood_size)
    pool_h = jax.block_until_ready(pool_h)
    assert pool_h.shape == (batch, bottleneck_dim)

    ref = reference_forward(h_states, seq_start_end, end_pos,
                            we, be, w1, b1, s1, t1, w2, b2, s2, t2,
                            neighborhood_size)
    np.testing.assert_allclose(np.asarray(pool_h), np.asarray(ref),
                               rtol=5e-2, atol=5e-2)
    print("KERNEL_OK")
</pallas_src>

<mosaic_0001>
module attributes {stable_mosaic.version = 11 : i64} {
  func.func @_pool_hidden_kernel(%arg0: i32, %arg1: memref<256x2xf32, #tpu.memory_space<vmem>>, %arg2: memref<64x64xbf16, #tpu.memory_space<vmem>>, %arg3: memref<256x64xbf16, #tpu.memory_space<vmem>>, %arg4: memref<2x256xbf16, #tpu.memory_space<vmem>>, %arg5: memref<64x256xbf16, #tpu.memory_space<vmem>>, %arg6: memref<1x256xf32, #tpu.memory_space<vmem>>, %arg7: memref<256x128xbf16, #tpu.memory_space<vmem>>, %arg8: memref<1x128xf32, #tpu.memory_space<vmem>>, %arg9: memref<64x128xf32, #tpu.memory_space<vmem>>) attributes {dimension_semantics = [#tpu.dimension_semantics<parallel>], iteration_bounds = array<i64: 1>, scalar_prefetch = 0 : i64, scratch_operands = 0 : i64, tpu.core_type = #tpu.core_type<tc>, window_params = [{transform_indices = @transform_0, window_bounds = array<i64: 256, 2>}, {transform_indices = @transform_1, window_bounds = array<i64: 64, 64>}, {pipeline_mode = #tpu.pipeline_mode<synchronous>, transform_indices = @transform_2, window_bounds = array<i64: 256, 64>}, {pipeline_mode = #tpu.pipeline_mode<synchronous>, transform_indices = @transform_3, window_bounds = array<i64: 2, 256>}, {pipeline_mode = #tpu.pipeline_mode<synchronous>, transform_indices = @transform_4, window_bounds = array<i64: 64, 256>}, {pipeline_mode = #tpu.pipeline_mode<synchronous>, transform_indices = @transform_5, window_bounds = array<i64: 1, 256>}, {pipeline_mode = #tpu.pipeline_mode<synchronous>, transform_indices = @transform_6, window_bounds = array<i64: 256, 128>}, {pipeline_mode = #tpu.pipeline_mode<synchronous>, transform_indices = @transform_7, window_bounds = array<i64: 1, 128>}, {transform_indices = @transform_8, window_bounds = array<i64: 64, 128>}]} {
    %c0 = arith.constant 0 : index
    %c0_0 = arith.constant 0 : index
    %0 = vector.load %arg2[%c0, %c0_0] : memref<64x64xbf16, #tpu.memory_space<vmem>>, vector<64x64xbf16>
    %c0_1 = arith.constant 0 : index
    %c0_2 = arith.constant 0 : index
    %1 = vector.load %arg5[%c0_1, %c0_2] : memref<64x256xbf16, #tpu.memory_space<vmem>>, vector<64x256xbf16>
    %cst = arith.constant dense<0.000000e+00> : vector<64x256xf32>
    %2 = tpu.matmul %0, %1, %cst {dimension_numbers = #tpu.dot_dimension_numbers<[1], [0], [0], [1], [0, 0, 1, 1], [], []>} : vector<64x64xbf16>, vector<64x256xbf16>, vector<64x256xf32> -> vector<64x256xf32>
    %c0_3 = arith.constant 0 : index
    %c0_4 = arith.constant 0 : index
    %3 = vector.load %arg3[%c0_3, %c0_4] : memref<256x64xbf16, #tpu.memory_space<vmem>>, vector<256x64xbf16>
    %4 = arith.truncf %2 : vector<64x256xf32> to vector<64x256xbf16>
    %cst_5 = arith.constant dense<0.000000e+00> : vector<256x256xf32>
    %5 = tpu.matmul %3, %4, %cst_5 {dimension_numbers = #tpu.dot_dimension_numbers<[1], [0], [0], [1], [0, 0, 1, 1], [], []>} : vector<256x64xbf16>, vector<64x256xbf16>, vector<256x256xf32> -> vector<256x256xf32>
    %c0_6 = arith.constant 0 : index
    %c0_7 = arith.constant 0 : index
    %6 = vector.load %arg1[%c0_6, %c0_7] : memref<256x2xf32, #tpu.memory_space<vmem>>, vector<256x2xf32>
    %7 = arith.truncf %6 : vector<256x2xf32> to vector<256x2xbf16>
    %c0_8 = arith.constant 0 : index
    %c0_9 = arith.constant 0 : index
    %8 = vector.load %arg4[%c0_8, %c0_9] : memref<2x256xbf16, #tpu.memory_space<vmem>>, vector<2x256xbf16>
    %cst_10 = arith.constant dense<0.000000e+00> : vector<256x256xf32>
    %9 = tpu.matmul %7, %8, %cst_10 {dimension_numbers = #tpu.dot_dimension_numbers<[1], [0], [0], [1], [0, 0, 1, 1], [], []>} : vector<256x2xbf16>, vector<2x256xbf16>, vector<256x256xf32> -> vector<256x256xf32>
    %10 = arith.addf %5, %9 : vector<256x256xf32>
    %c0_11 = arith.constant 0 : index
    %c0_12 = arith.constant 0 : index
    %11 = vector.load %arg6[%c0_11, %c0_12] : memref<1x256xf32, #tpu.memory_space<vmem>>, vector<1x256xf32>
    %12 = vector.broadcast %11 : vector<1x256xf32> to vector<256x256xf32>
    %13 = arith.addf %10, %12 : vector<256x256xf32>
    %cst_13 = arith.constant 0.000000e+00 : f32
    %14 = vector.broadcast %cst_13 : f32 to vector<256x256xf32>
    %15 = arith.maximumf %13, %14 : vector<256x256xf32>
    %16 = arith.truncf %15 : vector<256x256xf32> to vector<256x256xbf16>
    %c0_14 = arith.constant 0 : index
    %c0_15 = arith.constant 0 : index
    %17 = vector.load %arg7[%c0_14, %c0_15] : memref<256x128xbf16, #tpu.memory_space<vmem>>, vector<256x128xbf16>
    %cst_16 = arith.constant dense<0.000000e+00> : vector<256x128xf32>
    %18 = tpu.matmul %16, %17, %cst_16 {dimension_numbers = #tpu.dot_dimension_numbers<[1], [0], [0], [1], [0, 0, 1, 1], [], []>} : vector<256x256xbf16>, vector<256x128xbf16>, vector<256x128xf32> -> vector<256x128xf32>
    %c0_17 = arith.constant 0 : index
    %c0_18 = arith.constant 0 : index
    %19 = vector.load %arg8[%c0_17, %c0_18] : memref<1x128xf32, #tpu.memory_space<vmem>>, vector<1x128xf32>
    %20 = vector.broadcast %19 : vector<1x128xf32> to vector<256x128xf32>
    %21 = arith.addf %18, %20 : vector<256x128xf32>
    %cst_19 = arith.constant 0.000000e+00 : f32
    %22 = vector.broadcast %cst_19 : f32 to vector<256x128xf32>
    %23 = arith.maximumf %21, %22 : vector<256x128xf32>
    %24 = vector.extract_strided_slice %23 {offsets = [0, 0], sizes = [64, 128], strides = [1, 1]} : vector<256x128xf32> to vector<64x128xf32>
    %25 = vector.extract_strided_slice %23 {offsets = [64, 0], sizes = [64, 128], strides = [1, 1]} : vector<256x128xf32> to vector<64x128xf32>
    %26 = vector.extract_strided_slice %23 {offsets = [128, 0], sizes = [64, 128], strides = [1, 1]} : vector<256x128xf32> to vector<64x128xf32>
    %27 = vector.extract_strided_slice %23 {offsets = [192, 0], sizes = [64, 128], strides = [1, 1]} : vector<256x128xf32> to vector<64x128xf32>
    %28 = arith.maximumf %24, %25 : vector<64x128xf32>
    %29 = arith.maximumf %26, %27 : vector<64x128xf32>
    %30 = arith.maximumf %28, %29 : vector<64x128xf32>
    %c0_20 = arith.constant 0 : index
    %c0_21 = arith.constant 0 : index
    %31 = vector.load %arg9[%c0_20, %c0_21] : memref<64x128xf32, #tpu.memory_space<vmem>>, vector<64x128xf32>
    tpu.vector_store %arg9[%c0_20, %c0_21], %30 {strides = array<i32>} : memref<64x128xf32, #tpu.memory_space<vmem>>, vector<64x128xf32>,
    return
  }
  func.func @transform_0(%arg0: i32) -> (i32, i32) {
    %c0_i32 = arith.constant 0 : i32
    %c0_i32_0 = arith.constant 0 : i32
    return %arg0, %c0_i32 : i32, i32
  }
  func.func @transform_1(%arg0: i32) -> (i32, i32) {
    %c0_i32 = arith.constant 0 : i32
    %c0_i32_0 = arith.constant 0 : i32
    return %arg0, %c0_i32 : i32, i32
  }
  func.func @transform_2(%arg0: i32) -> (i32, i32) {
    %c0_i32 = arith.constant 0 : i32
    %c0_i32_0 = arith.constant 0 : i32
    %c0_i32_1 = arith.constant 0 : i32
    return %c0_i32, %c0_i32_0 : i32, i32
  }
  func.func @transform_3(%arg0: i32) -> (i32, i32) {
    %c0_i32 = arith.constant 0 : i32
    %c0_i32_0 = arith.constant 0 : i32
    %c0_i32_1 = arith.constant 0 : i32
    return %c0_i32, %c0_i32_0 : i32, i32
  }
  func.func @transform_4(%arg0: i32) -> (i32, i32) {
    %c0_i32 = arith.constant 0 : i32
    %c0_i32_0 = arith.constant 0 : i32
    %c0_i32_1 = arith.constant 0 : i32
    return %c0_i32, %c0_i32_0 : i32, i32
  }
  func.func @transform_5(%arg0: i32) -> (i32, i32) {
    %c0_i32 = arith.constant 0 : i32
    %c0_i32_0 = arith.constant 0 : i32
    %c0_i32_1 = arith.constant 0 : i32
    return %c0_i32, %c0_i32_0 : i32, i32
  }
  func.func @transform_6(%arg0: i32) -> (i32, i32) {
    %c0_i32 = arith.constant 0 : i32
    %c0_i32_0 = arith.constant 0 : i32
    %c0_i32_1 = arith.constant 0 : i32
    return %c0_i32, %c0_i32_0 : i32, i32
  }
  func.func @transform_7(%arg0: i32) -> (i32, i32) {
    %c0_i32 = arith.constant 0 : i32
    %c0_i32_0 = arith.constant 0 : i32
    %c0_i32_1 = arith.constant 0 : i32
    return %c0_i32, %c0_i32_0 : i32, i32
  }
  func.func @transform_8(%arg0: i32) -> (i32, i32) {
    %c0_i32 = arith.constant 0 : i32
    %c0_i32_0 = arith.constant 0 : i32
    return %arg0, %c0_i32 : i32, i32
  }
}

module attributes {stable_mosaic.version = 11 : i64} {
  func.func @_pool_hidden_kernel(%arg0: i32, %arg1: memref<256x2xf32, #tpu.memory_space<vmem>>, %arg2: memref<64x64xbf16, #tpu.memory_space<vmem>>, %arg3: memref<256x64xbf16, #tpu.memory_space<vmem>>, %arg4: memref<2x256xbf16, #tpu.memory_space<vmem>>, %arg5: memref<64x256xbf16, #tpu.memory_space<vmem>>, %arg6: memref<1x256xf32, #tpu.memory_space<vmem>>, %arg7: memref<256x128xbf16, #tpu.memory_space<vmem>>, %arg8: memref<1x128xf32, #tpu.memory_space<vmem>>, %arg9: memref<64x128xf32, #tpu.memory_space<vmem>>) attributes {dimension_semantics = [#tpu.dimension_semantics<parallel>], iteration_bounds = array<i64: 1>, scalar_prefetch = 0 : i64, scratch_operands = 0 : i64, tpu.core_type = #tpu.core_type<tc>, window_params = [{transform_indices = @transform_0, window_bounds = array<i64: 256, 2>}, {transform_indices = @transform_1, window_bounds = array<i64: 64, 64>}, {pipeline_mode = #tpu.pipeline_mode<synchronous>, transform_indices = @transform_2, window_bounds = array<i64: 256, 64>}, {pipeline_mode = #tpu.pipeline_mode<synchronous>, transform_indices = @transform_3, window_bounds = array<i64: 2, 256>}, {pipeline_mode = #tpu.pipeline_mode<synchronous>, transform_indices = @transform_4, window_bounds = array<i64: 64, 256>}, {pipeline_mode = #tpu.pipeline_mode<synchronous>, transform_indices = @transform_5, window_bounds = array<i64: 1, 256>}, {pipeline_mode = #tpu.pipeline_mode<synchronous>, transform_indices = @transform_6, window_bounds = array<i64: 256, 128>}, {pipeline_mode = #tpu.pipeline_mode<synchronous>, transform_indices = @transform_7, window_bounds = array<i64: 1, 128>}, {transform_indices = @transform_8, window_bounds = array<i64: 64, 128>}]} {
    %c0 = arith.constant 0 : index
    %c0_0 = arith.constant 0 : index
    %0 = vector.load %arg2[%c0, %c0_0] : memref<64x64xbf16, #tpu.memory_space<vmem>>, vector<64x64xbf16>
    %c0_1 = arith.constant 0 : index
    %c0_2 = arith.constant 0 : index
    %1 = vector.load %arg5[%c0_1, %c0_2] : memref<64x256xbf16, #tpu.memory_space<vmem>>, vector<64x256xbf16>
    %cst = arith.constant dense<0.000000e+00> : vector<64x256xf32>
    %2 = tpu.matmul %0, %1, %cst {dimension_numbers = #tpu.dot_dimension_numbers<[1], [0], [0], [1], [0, 0, 1, 1], [], []>} : vector<64x64xbf16>, vector<64x256xbf16>, vector<64x256xf32> -> vector<64x256xf32>
    %c0_3 = arith.constant 0 : index
    %c0_4 = arith.constant 0 : index
    %3 = vector.load %arg3[%c0_3, %c0_4] : memref<256x64xbf16, #tpu.memory_space<vmem>>, vector<256x64xbf16>
    %4 = arith.truncf %2 : vector<64x256xf32> to vector<64x256xbf16>
    %cst_5 = arith.constant dense<0.000000e+00> : vector<256x256xf32>
    %5 = tpu.matmul %3, %4, %cst_5 {dimension_numbers = #tpu.dot_dimension_numbers<[1], [0], [0], [1], [0, 0, 1, 1], [], []>} : vector<256x64xbf16>, vector<64x256xbf16>, vector<256x256xf32> -> vector<256x256xf32>
    %c0_6 = arith.constant 0 : index
    %c0_7 = arith.constant 0 : index
    %6 = vector.load %arg1[%c0_6, %c0_7] : memref<256x2xf32, #tpu.memory_space<vmem>>, vector<256x2xf32>
    %7 = arith.truncf %6 : vector<256x2xf32> to vector<256x2xbf16>
    %c0_8 = arith.constant 0 : index
    %c0_9 = arith.constant 0 : index
    %8 = vector.load %arg4[%c0_8, %c0_9] : memref<2x256xbf16, #tpu.memory_space<vmem>>, vector<2x256xbf16>
    %cst_10 = arith.constant dense<0.000000e+00> : vector<256x256xf32>
    %9 = tpu.matmul %7, %8, %cst_10 {dimension_numbers = #tpu.dot_dimension_numbers<[1], [0], [0], [1], [0, 0, 1, 1], [], []>} : vector<256x2xbf16>, vector<2x256xbf16>, vector<256x256xf32> -> vector<256x256xf32>
    %10 = arith.addf %5, %9 : vector<256x256xf32>
    %c0_11 = arith.constant 0 : index
    %c0_12 = arith.constant 0 : index
    %11 = vector.load %arg6[%c0_11, %c0_12] : memref<1x256xf32, #tpu.memory_space<vmem>>, vector<1x256xf32>
    %12 = vector.broadcast %11 : vector<1x256xf32> to vector<256x256xf32>
    %13 = arith.addf %10, %12 : vector<256x256xf32>
    %cst_13 = arith.constant 0.000000e+00 : f32
    %14 = vector.broadcast %cst_13 : f32 to vector<256x256xf32>
    %15 = arith.maximumf %13, %14 : vector<256x256xf32>
    %16 = arith.truncf %15 : vector<256x256xf32> to vector<256x256xbf16>
    %c0_14 = arith.constant 0 : index
    %c0_15 = arith.constant 0 : index
    %17 = vector.load %arg7[%c0_14, %c0_15] : memref<256x128xbf16, #tpu.memory_space<vmem>>, vector<256x128xbf16>
    %cst_16 = arith.constant dense<0.000000e+00> : vector<256x128xf32>
    %18 = tpu.matmul %16, %17, %cst_16 {dimension_numbers = #tpu.dot_dimension_numbers<[1], [0], [0], [1], [0, 0, 1, 1], [], []>} : vector<256x256xbf16>, vector<256x128xbf16>, vector<256x128xf32> -> vector<256x128xf32>
    %c0_17 = arith.constant 0 : index
    %c0_18 = arith.constant 0 : index
    %19 = vector.load %arg8[%c0_17, %c0_18] : memref<1x128xf32, #tpu.memory_space<vmem>>, vector<1x128xf32>
    %20 = vector.broadcast %19 : vector<1x128xf32> to vector<256x128xf32>
    %21 = arith.addf %18, %20 : vector<256x128xf32>
    %cst_19 = arith.constant 0.000000e+00 : f32
    %22 = vector.broadcast %cst_19 : f32 to vector<256x128xf32>
    %23 = arith.maximumf %21, %22 : vector<256x128xf32>
    %24 = vector.extract_strided_slice %23 {offsets = [0, 0], sizes = [64, 128], strides = [1, 1]} : vector<256x128xf32> to vector<64x128xf32>
    %25 = vector.extract_strided_slice %23 {offsets = [64, 0], sizes = [64, 128], strides = [1, 1]} : vector<256x128xf32> to vector<64x128xf32>
    %26 = vector.extract_strided_slice %23 {offsets = [128, 0], sizes = [64, 128], strides = [1, 1]} : vector<256x128xf32> to vector<64x128xf32>
    %27 = vector.extract_strided_slice %23 {offsets = [192, 0], sizes = [64, 128], strides = [1, 1]} : vector<256x128xf32> to vector<64x128xf32>
    %28 = arith.maximumf %24, %25 : vector<64x128xf32>
    %29 = arith.maximumf %26, %27 : vector<64x128xf32>
    %30 = arith.maximumf %28, %29 : vector<64x128xf32>
    %c0_20 = arith.constant 0 : index
    %c0_21 = arith.constant 0 : index
    %31 = vector.load %arg9[%c0_20, %c0_21] : memref<64x128xf32, #tpu.memory_space<vmem>>, vector<64x128xf32>
    tpu.vector_store %arg9[%c0_20, %c0_21], %30 {strides = array<i32>} : memref<64x128xf32, #tpu.memory_space<vmem>>, vector<64x128xf32>,
    return
  }
  func.func @transform_0(%arg0: i32) -> (i32, i32) {
    %c0_i32 = arith.constant 0 : i32
    %c0_i32_0 = arith.constant 0 : i32
    return %arg0, %c0_i32 : i32, i32
  }
  func.func @transform_1(%arg0: i32) -> (i32, i32) {
    %c0_i32 = arith.constant 0 : i32
    %c0_i32_0 = arith.constant 0 : i32
    return %arg0, %c0_i32 : i32, i32
  }
  func.func @transform_2(%arg0: i32) -> (i32, i32) {
    %c0_i32 = arith.constant 0 : i32
    %c0_i32_0 = arith.constant 0 : i32
    %c0_i32_1 = arith.constant 0 : i32
    return %c0_i32, %c0_i32_0 : i32, i32
  }
  func.func @transform_3(%arg0: i32) -> (i32, i32) {
    %c0_i32 = arith.constant 0 : i32
    %c0_i32_0 = arith.constant 0 : i32
    %c0_i32_1 = arith.constant 0 : i32
    return %c0_i32, %c0_i32_0 : i32, i32
  }
  func.func @transform_4(%arg0: i32) -> (i32, i32) {
    %c0_i32 = arith.constant 0 : i32
    %c0_i32_0 = arith.constant 0 : i32
    %c0_i32_1 = arith.constant 0 : i32
    return %c0_i32, %c0_i32_0 : i32, i32
  }
  func.func @transform_5(%arg0: i32) -> (i32, i32) {
    %c0_i32 = arith.constant 0 : i32
    %c0_i32_0 = arith.constant 0 : i32
    %c0_i32_1 = arith.constant 0 : i32
    return %c0_i32, %c0_i32_0 : i32, i32
  }
  func.func @transform_6(%arg0: i32) -> (i32, i32) {
    %c0_i32 = arith.constant 0 : i32
    %c0_i32_0 = arith.constant 0 : i32
    %c0_i32_1 = arith.constant 0 : i32
    return %c0_i32, %c0_i32_0 : i32, i32
  }
  func.func @transform_7(%arg0: i32) -> (i32, i32) {
    %c0_i32 = arith.constant 0 : i32
    %c0_i32_0 = arith.constant 0 : i32
    %c0_i32_1 = arith.constant 0 : i32
    return %c0_i32, %c0_i32_0 : i32, i32
  }
  func.func @transform_8(%arg0: i32) -> (i32, i32) {
    %c0_i32 = arith.constant 0 : i32
    %c0_i32_0 = arith.constant 0 : i32
    return %arg0, %c0_i32 : i32, i32
  }
}

</mosaic_0001>

<bundles_post_ra>
// kernel: tpu_custom_call.1
= control target key start
LH: loop header
LB: loop body
LE: loop exit
PB: predicated region body
PF: predicated region fallthrough
CT: control target
= control target key end

     0   :  { %s2429_s0 = inlined_call_operand.vmem [shape: f32[256,2], index: 0, kind: input, shape index: {}]   ;;  %s2430_s1 = inlined_call_operand.vmem [shape: bf16[64,64], index: 1, kind: input, shape index: {}]   ;;  %s2431_s2 = inlined_call_operand.vmem [shape: bf16[256,64], index: 2, kind: input, shape index: {}]   ;;  %s2432_s3 = inlined_call_operand.vmem [shape: bf16[2,256], index: 3, kind: input, shape index: {}]   ;;  %s2433_s4 = inlined_call_operand.vmem [shape: bf16[64,256], index: 4, kind: input, shape index: {}]   ;;  %s2434_s5 = inlined_call_operand.vmem [shape: f32[1,256], index: 5, kind: input, shape index: {}]   ;;  %s2435_s6 = inlined_call_operand.vmem [shape: bf16[256,128], index: 6, kind: input, shape index: {}]   ;;  %s2436_s7 = inlined_call_operand.vmem [shape: f32[1,128], index: 7, kind: input, shape index: {}]   ;;  %s2437_s8 = inlined_call_operand.hbm [shape: f32[64,128], index: 8, kind: output, shape index: {}]  }
   0x1   :  { %v1409_v0 = vld [vmem:[%s2433_s4 + $0x30] sm:$0xf]  ;;  %v1626_v1 = vld [vmem:[%s2433_s4 + $0x34] sm:$0xf0]  ;;  %v1625_v2 = vld [vmem:[%s2433_s4 + $0x34] sm:$0xf] }
   0x2   :  { %v1410_v3 = vor.u32 %v1626_v1, %v1409_v0  ;;  %v1411_v4 = vld [vmem:[%s2433_s4 + $0x38] sm:$0xf0]  ;;  %v1401_v5 = vld [vmem:[%s2433_s4 + $0x20] sm:$0xf]  ;;  %v1624_v6 = vld [vmem:[%s2433_s4 + $0x24] sm:$0xf0] }
   0x3   :  { %v1414_v7 = vor.u32 %v1625_v2, %v1411_v4  ;;  %v1623_v8 = vld [vmem:[%s2433_s4 + $0x24] sm:$0xf]  ;;  %v1403_v9 = vld [vmem:[%s2433_s4 + $0x28] sm:$0xf0]  ;;  %v1402_v10 = vor.u32 %v1624_v6, %v1401_v5  ;;  %v1393_v12 = vld [vmem:[%s2433_s4 + $0x10] sm:$0xf] }
   0x4   :  { %124 = vmatpush.bf16.msra.mxu0 %v1410_v3  ;;  %v1406_v11 = vor.u32 %v1623_v8, %v1403_v9  ;;  %v1622_v13 = vld [vmem:[%s2433_s4 + $0x14] sm:$0xf0]  ;;  %v1621_v14 = vld [vmem:[%s2433_s4 + $0x14] sm:$0xf]  ;;  %v1395_v15 = vld [vmem:[%s2433_s4 + $0x18] sm:$0xf0] }
   0x5   :  { %153 = vmatpush.bf16.msra.mxu1 %v1414_v7 }
   0x6   :  { %13 = vsyncpa [#allocation3], 0  ;;  %v1394_v16 = vor.u32 %v1622_v13, %v1393_v12  ;;  %v1398_v17 = vor.u32 %v1621_v14, %v1395_v15  ;;  %v1385_v18 = vld [vmem:[%s2433_s4] sm:$0xf]  ;;  %v1620_v19 = vld [vmem:[%s2433_s4 + $0x4] sm:$0xf0] }
   0x7   :  { %v1619_v20 = vld [vmem:[%s2433_s4 + $0x4] sm:$0xf]  ;;  %v1387_v21 = vld [vmem:[%s2433_s4 + $0x8] sm:$0xf0]  ;;  %v1386_v22 = vor.u32 %v1620_v19, %v1385_v18  ;;  %vm107_vm0 = vcmask 523264   ;;  %vm320_vm1 = vcmask 1040384  }
   0x8   :  { %125 = vmatpush.bf16.msra.mxu0 %v1402_v10  ;;  %v1390_v23 = vor.u32 %v1619_v20, %v1387_v21  ;;  %v1615_v24 = vld [vmem:[%s2430_s1] sm:$0xff]  ;;  %v1616_v25 = vld [vmem:[%s2430_s1 + $0x8] sm:$0xff]  ;;  %v1617_v31 = vld [vmem:[%s2430_s1 + $0x10] sm:$0xff]  ;;  %vm271_vm2 = vcmask 15360   ;;  %s1692_s28 = smov 128   ;;  %s1693_s29 = smov 8  }
   0x9   :  { %154 = vmatpush.bf16.msra.mxu1 %v1406_v11  ;;  %v266_v26 = vld [vmem:[%s2432_s3] sm:$0x3]  ;;  %v1618_v32 = vld [vmem:[%s2430_s1 + $0x18] sm:$0xff]  ;;  %v219_v34 = vld [vmem:[%s2429_s0 + $0x8] sm:$0xff]  ;;  %s1355_s1 = sshll.u32 %s2437_s8, 4  ;;  %s1356_s1 = int_to_ptr.hbm [resolvable:$true] %s1355_s1 }
   0xa   :  { %268 = vst [vmem:[#allocation1] ss:$9 sm:$0xff] %v266_v26  ;;  %v218_v33 = vld [vmem:[%s2429_s0] sm:$0xff]  ;;  %v220_v36 = vld [vmem:[%s2429_s0 + $0x10] sm:$0xff]  ;;  %v221_v37 = vld [vmem:[%s2429_s0 + $0x18] sm:$0xff] }
   0xb   :  { %v250_v35 = vpack.c.bf16 %v219_v34, %v218_v33  ;;  %v251_v38 = vpack.c.bf16 %v221_v37, %v220_v36  ;;  %v222_v39 = vld [vmem:[%s2429_s0 + $0x20] sm:$0xff]  ;;  %v223_v40 = vld [vmem:[%s2429_s0 + $0x28] sm:$0xff]  ;;  %v228_v42 = vld [vmem:[%s2429_s0 + $0x50] sm:$0xff] }
   0xc   :  { %126 = vmatpush.bf16.msra.mxu0 %v1394_v16  ;;  %v252_v41 = vpack.c.bf16 %v223_v40, %v222_v39  ;;  %v229_v43 = vld [vmem:[%s2429_s0 + $0x58] sm:$0xff]  ;;  %v224_v46 = vld [vmem:[%s2429_s0 + $0x30] sm:$0xff]  ;;  %v230_v52 = vld [vmem:[%s2429_s0 + $0x60] sm:$0xff] }
   0xd   :  { %155 = vmatpush.bf16.msra.mxu1 %v1398_v17  ;;  %v255_v44 = vpack.c.bf16 %v229_v43, %v228_v42  ;;  %v225_v47 = vld [vmem:[%s2429_s0 + $0x38] sm:$0xff]  ;;  %v231_v53 = vld [vmem:[%s2429_s0 + $0x68] sm:$0xff]  ;;  %v226_v56 = vld [vmem:[%s2429_s0 + $0x40] sm:$0xff] }
   0xe   :  { %v253_v49 = vpack.c.bf16 %v225_v47, %v224_v46  ;;  %v256_v54 = vpack.c.bf16 %v231_v53, %v230_v52  ;;  %v227_v57 = vld [vmem:[%s2429_s0 + $0x48] sm:$0xff]  ;;  %v232_v62 = vld [vmem:[%s2429_s0 + $0x70] sm:$0xff]  ;;  %v233_v63 = vld [vmem:[%s2429_s0 + $0x78] sm:$0xff] }
   0xf   :  { %v254_v59 = vpack.c.bf16 %v227_v57, %v226_v56  ;;  %v257_v0 = vpack.c.bf16 %v233_v63, %v232_v62  ;;  %v234_v5 = vld [vmem:[%s2429_s0 + $0x80] sm:$0xff]  ;;  %v235_v6 = vld [vmem:[%s2429_s0 + $0x88] sm:$0xff]  ;;  %v236_v14 = vld [vmem:[%s2429_s0 + $0x90] sm:$0xff] }
  0x10   :  { %127 = vmatpush.bf16.msra.mxu0 %v1386_v22  ;;  %v258_v7 = vpack.c.bf16 %v235_v6, %v234_v5  ;;  %v237_v15 = vld [vmem:[%s2429_s0 + $0x98] sm:$0xff]  ;;  %v238_v26 = vld [vmem:[%s2429_s0 + $0xa0] sm:$0xff]  ;;  %v1629_v36 = vld [vmem:[%s2431_s2 + $0x10] sm:$0xff] }
  0x11   :  { %156 = vmatpush.bf16.msra.mxu1 %v1390_v23  ;;  %v269_v27 = vld [vmem:[#allocation1] sm:$0xff]  ;;  %v270_v28 = vld [vmem:[#allocation1 + $0x9] sm:$0xff]  ;;  %v1650_v16 = vld [vmem:[%s2435_s6 + $0x38] sm:$0xff]  ;;  %v259_v18 = vpack.c.bf16 %v237_v15, %v236_v14 }
  0x12   :  { %v321_v29 = vsel %vm320_vm1, %v269_v27, 0  ;;  %v323_v30 = vsel %vm320_vm1, %v270_v28, 0  ;;  %v239_v27 = vld [vmem:[%s2429_s0 + $0xa8] sm:$0xff]  ;;  %v241_v33 = vld [vmem:[%s2429_s0 + $0xb8] sm:$0xff]  ;;  %v242_v40 = vld [vmem:[%s2429_s0 + $0xc0] sm:$0xff] }
  0x13   :  { %1415 = vmatmul.msk.bf16.vlgmr.msra.gmra.mxu0 %vm107_vm0, %v1615_v24  ;;  %1659 = vmatpush.bf16.msra.mxu2 %v321_v29  ;;  %v260_v28 = vpack.c.bf16 %v239_v27, %v238_v26  ;;  %v1656_v39 = vld [vmem:[%s2435_s6 + $0x68] sm:$0xff]  ;;  %v1647_v56 = vld [vmem:[%s2435_s6 + $0x20] sm:$0xff]  ;;  %v1646_v6 = vld [vmem:[%s2435_s6 + $0x18] sm:$0xff] }
  0x14   :  { %1419 = vmatmul.msk.bf16.vlgmr.msra.gmra.mxu1 %vm107_vm0, %v1615_v24  ;;  %332 = vmatpush.bf16.msrb.mxu0 %v321_v29  ;;  %v1627_v24 = vld [vmem:[%s2431_s2] sm:$0xff]  ;;  %v1628_v29 = vld [vmem:[%s2431_s2 + $0x8] sm:$0xff]  ;;  %v1633_v15 = vld [vmem:[%s2431_s2 + $0x30] sm:$0xff] }
  0x15   :  { %421 = vmatpush.bf16.msrb.mxu1 %v323_v30  ;;  %1660 = vmatpush.bf16.msra.mxu3 %v323_v30  ;;  %v1649_v30 = vld [vmem:[%s2435_s6 + $0x30] sm:$0xff]  ;;  %v1655_v57 = vld [vmem:[%s2435_s6 + $0x60] sm:$0xff] }
  0x16   :  { %1428 = vmatmul.msk.bf16.vlgmr.msra.gmra.mxu2 %vm271_vm2, %v255_v44  ;;  %v1643_v26 = vld [vmem:[%s2435_s6] sm:$0xff] }
  0x17   :  { %1107 = vmatpush.bf16.msrb.mxu2 %v1650_v16  ;;  %v1651_v27 = vld [vmem:[%s2435_s6 + $0x40] sm:$0xff] }
  0x18   :  { %1444 = vmatmul.msk.bf16.vlgmr.msra.gmra.mxu3 %vm271_vm2, %v255_v44 }
  0x1b   :  { %1108 = vmatpush.bf16.msrb.mxu2 %v1649_v30  ;;  %v1634_v30 = vld [vmem:[%s2431_s2 + $0x38] sm:$0xff] }
  0x23   :  { %1416 = vmatmul.msk.bf16.gmra.mxu0 %vm107_vm0, %v1616_v25 }
  0x24   :  { %1420 = vmatmul.msk.bf16.gmra.mxu1 %vm107_vm0, %v1616_v25  ;;  %v1658_v25 = vld [vmem:[%s2435_s6 + $0x78] sm:$0xff] }
  0x25   :  { %1196 = vmatpush.bf16.msrb.mxu3 %v1658_v25 }
  0x26   :  { %1429 = vmatmul.msk.bf16.gmra.mxu2 %vm271_vm2, %v256_v54 }
  0x28   :  { %1445 = vmatmul.msk.bf16.gmra.mxu3 %vm271_vm2, %v256_v54  ;;  %v1631_v54 = vld [vmem:[%s2431_s2 + $0x20] sm:$0xff] }
  0x33   :  { %1417 = vmatmul.msk.bf16.gmra.mxu0 %vm107_vm0, %v1617_v31 }
  0x34   :  { %1421 = vmatmul.msk.bf16.gmra.mxu1 %vm107_vm0, %v1617_v31  ;;  %v1657_v31 = vld [vmem:[%s2435_s6 + $0x70] sm:$0xff] }
  0x35   :  { %1197 = vmatpush.bf16.msrb.mxu3 %v1657_v31 }
  0x36   :  { %1430 = vmatmul.msk.bf16.gmra.mxu2 %vm271_vm2, %v257_v0 }
  0x38   :  { %1446 = vmatmul.msk.bf16.gmra.mxu3 %vm271_vm2, %v257_v0 }
  0x39   :  { %1198 = vmatpush.bf16.msrb.mxu3 %v1656_v39 }
  0x3d   :  { %1199 = vmatpush.bf16.msrb.mxu3 %v1655_v57 }
  0x43   :  { %1418 = vmatmul.msk.bf16.gmra.mxu0 %vm107_vm0, %v1618_v32 }
  0x44   :  { %1422 = vmatmul.msk.bf16.gmra.mxu1 %vm107_vm0, %v1618_v32  ;;  %v240_v32 = vld [vmem:[%s2429_s0 + $0xb0] sm:$0xff] }
  0x45   :  { %v261_v34 = vpack.c.bf16 %v241_v33, %v240_v32 }
  0x46   :  { %1431 = vmatmul.msk.bf16.gmra.mxu2 %vm271_vm2, %v258_v7 }
  0x48   :  { %1447 = vmatmul.msk.bf16.gmra.mxu3 %vm271_vm2, %v258_v7  ;;  %v1654_v7 = vld [vmem:[%s2435_s6 + $0x58] sm:$0xff] }
  0x49   :  { %1200 = vmatpush.bf16.msrb.mxu3 %v1654_v7 }
  0x53   :  { %1423 = vmatmul.msk.bf16.vlgmr.msrb.gmra.mxu0 %vm271_vm2, %v250_v35 }
  0x54   :  { %1439 = vmatmul.msk.bf16.vlgmr.msrb.gmra.mxu1 %vm271_vm2, %v250_v35 }
  0x56   :  { %1432 = vmatmul.msk.bf16.gmra.mxu2 %vm271_vm2, %v259_v18 }
  0x58   :  { %1448 = vmatmul.msk.bf16.gmra.mxu3 %vm271_vm2, %v259_v18 }
  0x63   :  { %1424 = vmatmul.msk.bf16.gmra.mxu0 %vm271_vm2, %v251_v38 }
  0x64   :  { %1440 = vmatmul.msk.bf16.gmra.mxu1 %vm271_vm2, %v251_v38  ;;  %v1648_v38 = vld [vmem:[%s2435_s6 + $0x28] sm:$0xff] }
  0x65   :  { %1109 = vmatpush.bf16.msrb.mxu2 %v1648_v38 }
  0x66   :  { %1433 = vmatmul.msk.bf16.gmra.mxu2 %vm271_vm2, %v260_v28 }
  0x68   :  { %1449 = vmatmul.msk.bf16.gmra.mxu3 %vm271_vm2, %v260_v28 }
  0x69   :  { %1110 = vmatpush.bf16.msrb.mxu2 %v1647_v56 }
  0x6d   :  { %1111 = vmatpush.bf16.msrb.mxu2 %v1646_v6 }
  0x73   :  { %1425 = vmatmul.msk.bf16.gmra.mxu0 %vm271_vm2, %v252_v41 }
  0x74   :  { %1441 = vmatmul.msk.bf16.gmra.mxu1 %vm271_vm2, %v252_v41  ;;  %v243_v41 = vld [vmem:[%s2429_s0 + $0xc8] sm:$0xff] }
  0x75   :  { %v262_v42 = vpack.c.bf16 %v243_v41, %v242_v40 }
  0x76   :  { %1434 = vmatmul.msk.bf16.gmra.mxu2 %vm271_vm2, %v261_v34 }
  0x78   :  { %1450 = vmatmul.msk.bf16.gmra.mxu3 %vm271_vm2, %v261_v34 }
  0x83   :  { %1426 = vmatmul.msk.bf16.gmra.mxu0 %vm271_vm2, %v253_v49 }
  0x84   :  { %1442 = vmatmul.msk.bf16.gmra.mxu1 %vm271_vm2, %v253_v49  ;;  %v245_v49 = vld [vmem:[%s2429_s0 + $0xd8] sm:$0xff] }
  0x86   :  { %1435 = vmatmul.msk.bf16.gmra.mxu2 %vm271_vm2, %v262_v42 }
  0x88   :  { %1451 = vmatmul.msk.bf16.gmra.mxu3 %vm271_vm2, %v262_v42  ;;  %v809_v42 = vld [vmem:[%s2434_s5] sm:$0x3] }
  0x90   :  { %v1840_v45 = vpop.f32.mrf.mxu0 }
  0x91   :  { %v1848_v48 = vpop.f32.mrf.mxu1 }
  0x93   :  { %1427 = vmatmul.msk.bf16.gmra.mxu0 %vm271_vm2, %v254_v59 }
  0x94   :  { %1443 = vmatmul.msk.bf16.gmra.mxu1 %vm271_vm2, %v254_v59 }
  0x98   :  { %v131_v50 = vpop.f32.mrf.mxu0 }
  0x99   :  { %v160_v51 = vpop.f32.mrf.mxu1  ;;  %v210_v22 = vpack.c.bf16 %v131_v50, %v1840_v45  ;;  %v1630_v45 = vld [vmem:[%s2431_s2 + $0x18] sm:$0xff]  ;;  %v1982_v53 = vpop.f32.mrf.mxu2 }
  0x9a   :  { %v211_v23 = vpack.c.bf16 %v160_v51, %v1848_v48  ;;  %v244_v48 = vld [vmem:[%s2429_s0 + $0xd0] sm:$0xff] }
  0x9b   :  { %v263_v50 = vpack.c.bf16 %v245_v49, %v244_v48  ;;  %v2113_v48 = vperm.slane %v809_v42, 0 }
  0x9d   :  { %1436 = vmatmul.msk.bf16.gmra.mxu2 %vm271_vm2, %v263_v50  ;;  %1452 = vmatmul.msk.bf16.gmra.mxu3 %vm271_vm2, %v263_v50  ;;  %v2116_v50 = vperm.slane %v809_v42, 1 }
  0xa0   :  { %v134_v55 = vpop.f32.mrf.mxu0 }
  0xa1   :  { %v163_v58 = vpop.f32.mrf.mxu1  ;;  %v2000_v59 = vpop.f32.mrf.mxu2 }
  0xa8   :  { %v136_v60 = vpop.f32.mrf.mxu0 }
  0xa9   :  { %v165_v61 = vpop.f32.mrf.mxu1  ;;  %v212_v20 = vpack.c.bf16 %v136_v60, %v134_v55  ;;  %v1987_v55 = vpop.f32.mrf.mxu3  ;;  %v247_v60 = vld [vmem:[%s2429_s0 + $0xe8] sm:$0xff] }
  0xaa   :  { %v213_v21 = vpack.c.bf16 %v165_v61, %v163_v58  ;;  %v246_v58 = vld [vmem:[%s2429_s0 + $0xe0] sm:$0xff] }
  0xab   :  { %v264_v62 = vpack.c.bf16 %v247_v60, %v246_v58 }
  0xad   :  { %1437 = vmatmul.msk.bf16.gmra.mxu2 %vm271_vm2, %v264_v62  ;;  %1453 = vmatmul.msk.bf16.gmra.mxu3 %vm271_vm2, %v264_v62 }
  0xb0   :  { %v139_v1 = vpop.f32.mrf.mxu0 }
  0xb1   :  { %v168_v2 = vpop.f32.mrf.mxu1  ;;  %v2009_v0 = vpop.f32.mrf.mxu3 }
  0xb8   :  { %v141_v3 = vpop.f32.mrf.mxu0 }
  0xb9   :  { %v170_v4 = vpop.f32.mrf.mxu1  ;;  %v214_v17 = vpack.c.bf16 %v141_v3, %v139_v1  ;;  %v2013_v1 = vpop.f32.mrf.mxu2 }
  0xba   :  { %v215_v19 = vpack.c.bf16 %v170_v4, %v168_v2  ;;  %v1632_v2 = vld [vmem:[%s2431_s2 + $0x28] sm:$0xff]  ;;  %v2018_v3 = vpop.f32.mrf.mxu3 }
  0xc0   :  { %v144_v8 = vpop.f32.mrf.mxu0 }
  0xc1   :  { %v173_v9 = vpop.f32.mrf.mxu1 }
  0xc8   :  { %v146_v10 = vpop.f32.mrf.mxu0 }
  0xc9   :  { %v216_v11 = vpack.c.bf16 %v146_v10, %v144_v8  ;;  %v175_v12 = vpop.f32.mrf.mxu1  ;;  %v248_v8 = vld [vmem:[%s2429_s0 + $0xf0] sm:$0xff]  ;;  %v2038_v10 = vpop.f32.mrf.mxu2 }
  0xca   :  { %v217_v13 = vpack.c.bf16 %v175_v12, %v173_v9  ;;  %v249_v9 = vld [vmem:[%s2429_s0 + $0xf8] sm:$0xff]  ;;  %v2040_v12 = vpop.f32.mrf.mxu3 }
  0xcb   :  { %635 = vmatpush.bf16.msra.mxu0 %v216_v11  ;;  %v265_v11 = vpack.c.bf16 %v249_v9, %v248_v8 }
  0xcc   :  { %724 = vmatpush.bf16.msra.mxu1 %v217_v13 }
  0xcd   :  { %1438 = vmatmul.msk.bf16.gmra.mxu2 %vm271_vm2, %v265_v11  ;;  %1454 = vmatmul.msk.bf16.gmra.mxu3 %vm271_vm2, %v265_v11 }
  0xcf   :  { %636 = vmatpush.bf16.msra.mxu0 %v214_v17 }
  0xd0   :  { %725 = vmatpush.bf16.msra.mxu1 %v215_v19  ;;  %v1934_v35 = vpop.f32.mrf.mxu0 }
  0xd1   :  { %v1939_v37 = vpop.f32.mrf.mxu1  ;;  %v2051_v16 = vpop.f32.mrf.mxu2 }
  0xd2   :  { %v2054_v17 = vpop.f32.mrf.mxu3 }
  0xd3   :  { %637 = vmatpush.bf16.msra.mxu0 %v212_v20  ;;  %v1645_v20 = vld [vmem:[%s2435_s6 + $0x10] sm:$0xff] }
  0xd4   :  { %726 = vmatpush.bf16.msra.mxu1 %v213_v21  ;;  %v1653_v21 = vld [vmem:[%s2435_s6 + $0x50] sm:$0xff]  ;;  %1112 = vmatpush.bf16.msrb.mxu2 %v1645_v20 }
  0xd5   :  { %1201 = vmatpush.bf16.msrb.mxu3 %v1653_v21 }
  0xd7   :  { %638 = vmatpush.bf16.msra.mxu0 %v210_v22  ;;  %v1644_v22 = vld [vmem:[%s2435_s6 + $0x8] sm:$0xff] }
  0xd8   :  { %727 = vmatpush.bf16.msra.mxu1 %v211_v23  ;;  %v1955_v43 = vpop.f32.mrf.mxu0  ;;  %v1652_v23 = vld [vmem:[%s2435_s6 + $0x48] sm:$0xff]  ;;  %1113 = vmatpush.bf16.msrb.mxu2 %v1644_v22 }
  0xd9   :  { %v1957_v44 = vpop.f32.mrf.mxu1  ;;  %1202 = vmatpush.bf16.msrb.mxu3 %v1652_v23 }
  0xda   :  { %1519 = vmatmul.msk.bf16.vlgmr.msra.gmra.mxu0 %vm107_vm0, %v1627_v24  ;;  %v2075_v25 = vpop.f32.mrf.mxu3 }
  0xdb   :  { %1535 = vmatmul.msk.bf16.vlgmr.msra.gmra.mxu1 %vm107_vm0, %v1627_v24  ;;  %v2073_v24 = vpop.f32.mrf.mxu2 }
  0xdc   :  { %1114 = vmatpush.bf16.msrb.mxu2 %v1643_v26 }
  0xdd   :  { %1203 = vmatpush.bf16.msrb.mxu3 %v1651_v27 }
  0xe0   :  { %v1964_v46 = vpop.f32.mrf.mxu0 }
  0xe1   :  { %v1967_v47 = vpop.f32.mrf.mxu1 }
  0xe2   :  { %v2094_v32 = vpop.f32.mrf.mxu3 }
  0xe3   :  { %v2092_v31 = vpop.f32.mrf.mxu2 }
  0xe8   :  { %v1978_v51 = vpop.f32.mrf.mxu0 }
  0xe9   :  { %v1980_v52 = vpop.f32.mrf.mxu1 }
  0xea   :  { %1520 = vmatmul.msk.bf16.gmra.mxu0 %vm107_vm0, %v1628_v29  ;;  %v2105_v41 = vpop.f32.mrf.mxu3 }
  0xeb   :  { %1536 = vmatmul.msk.bf16.gmra.mxu1 %vm107_vm0, %v1628_v29  ;;  %v2103_v39 = vpop.f32.mrf.mxu2 }
  0xf0   :  { %v2005_v61 = vpop.f32.mrf.mxu0 }
  0xf1   :  { %v2007_v63 = vpop.f32.mrf.mxu1 }
  0xf2   :  { %v2125_v6 = vpop.f32.mrf.mxu3 }
  0xf8   :  { %v2020_v4 = vpop.f32.mrf.mxu0 }
  0xf9   :  { %v2022_v5 = vpop.f32.mrf.mxu1 }
  0xfa   :  { %1521 = vmatmul.msk.bf16.gmra.mxu0 %vm107_vm0, %v1629_v36  ;;  %v2136_v26 = vpop.f32.mrf.mxu3 }
  0xfb   :  { %1537 = vmatmul.msk.bf16.gmra.mxu1 %vm107_vm0, %v1629_v36  ;;  %v1635_v36 = vld [vmem:[%s2431_s2 + $0x40] sm:$0xff] }
 0x100   :  { %v2042_v13 = vpop.f32.mrf.mxu0 }
 0x101   :  { %v2046_v14 = vpop.f32.mrf.mxu1 }
 0x108   :  { %v2057_v18 = vpop.f32.mrf.mxu0 }
 0x109   :  { %v2059_v19 = vpop.f32.mrf.mxu1 }
 0x10a   :  { %1522 = vmatmul.msk.bf16.gmra.mxu0 %vm107_vm0, %v1630_v45 }
 0x10b   :  { %1538 = vmatmul.msk.bf16.gmra.mxu1 %vm107_vm0, %v1630_v45 }
 0x110   :  { %v2083_v28 = vpop.f32.mrf.mxu0 }
 0x111   :  { %v2085_v29 = vpop.f32.mrf.mxu1 }
 0x118   :  { %v2096_v33 = vpop.f32.mrf.mxu0 }
 0x119   :  { %v2098_v34 = vpop.f32.mrf.mxu1 }
 0x11a   :  { %1523 = vmatmul.msk.bf16.gmra.mxu0 %vm107_vm0, %v1631_v54 }
 0x11b   :  { %1539 = vmatmul.msk.bf16.gmra.mxu1 %vm107_vm0, %v1631_v54 }
 0x12a   :  { %1524 = vmatmul.msk.bf16.gmra.mxu0 %vm107_vm0, %v1632_v2 }
 0x12b   :  { %1540 = vmatmul.msk.bf16.gmra.mxu1 %vm107_vm0, %v1632_v2  ;;  %v2122_v2 = vpop.f32.mrf.mxu2 }
 0x133   :  { %v2133_v22 = vpop.f32.mrf.mxu2 }
 0x13a   :  { %1525 = vmatmul.msk.bf16.gmra.mxu0 %vm107_vm0, %v1633_v15 }
 0x13b   :  { %1541 = vmatmul.msk.bf16.gmra.mxu1 %vm107_vm0, %v1633_v15 }
 0x14a   :  { %1526 = vmatmul.msk.bf16.gmra.mxu0 %vm107_vm0, %v1634_v30 }
 0x14b   :  { %1542 = vmatmul.msk.bf16.gmra.mxu1 %vm107_vm0, %v1634_v30 }
 0x157   :  { %v640_v38 = vpop.f32.mrf.mxu0 }
 0x158   :  { %v729_v40 = vpop.f32.mrf.mxu1  ;;  %v641_v45 = vadd.f32 %v640_v38, %v1934_v35 }
 0x159   :  { %v730_v49 = vadd.f32 %v729_v40, %v1939_v37 }
 0x15a   :  { %1527 = vmatmul.msk.bf16.gmra.mxu0 %vm107_vm0, %v1635_v36  ;;  %v815_v56 = vadd.f32 %v2113_v48, %v641_v45 }
 0x15b   :  { %1543 = vmatmul.msk.bf16.gmra.mxu1 %vm107_vm0, %v1635_v36  ;;  %v816_v60 = vadd.f32 %v2116_v50, %v730_v49 }
 0x15c   :  { %v879_v7 = vmax.f32 %v815_v56, 0.0 }
 0x15d   :  { %v880_v9 = vmax.f32 %v816_v60, 0.0  ;;  %v2145_v60 = vpop.f32.mrf.mxu2 }
 0x15f   :  { %v642_v54 = vpop.f32.mrf.mxu0 }
 0x160   :  { %v643_v57 = vadd.f32 %v642_v54, %v1955_v43  ;;  %v731_v58 = vpop.f32.mrf.mxu1  ;;  %v1636_v43 = vld [vmem:[%s2431_s2 + $0x48] sm:$0xff] }
 0x161   :  { %v732_v62 = vadd.f32 %v731_v58, %v1957_v44 }
 0x162   :  { %v817_v35 = vadd.f32 %v2113_v48, %v643_v57 }
 0x163   :  { %v818_v37 = vadd.f32 %v2116_v50, %v732_v62  ;;  %v2150_v62 = vpop.f32.mrf.mxu3 }
 0x164   :  { %v881_v8 = vmax.f32 %v817_v35, 0.0 }
 0x165   :  { %v882_v11 = vmax.f32 %v818_v37, 0.0 }
 0x166   :  { %v943_v15 = vpack.c.bf16 %v881_v8, %v879_v7 }
 0x167   :  { %v645_v20 = vpop.f32.mrf.mxu0  ;;  %v944_v21 = vpack.c.bf16 %v882_v11, %v880_v9  ;;  %v2156_v11 = vpop.f32.mrf.mxu2 }
 0x168   :  { %v734_v44 = vpop.f32.mrf.mxu1  ;;  %1115 = vmatmul.bf16.vlgmr.msrb.gmra.mxu2 %v943_v15  ;;  %v646_v23 = vadd.f32 %v645_v20, %v1964_v46 }
 0x169   :  { %1204 = vmatmul.bf16.vlgmr.msrb.gmra.mxu3 %v944_v21  ;;  %v735_v27 = vadd.f32 %v734_v44, %v1967_v47 }
 0x16a   :  { %1528 = vmatmul.msk.bf16.gmra.mxu0 %vm107_vm0, %v1636_v43  ;;  %v819_v36 = vadd.f32 %v2113_v48, %v646_v23 }
 0x16b   :  { %1544 = vmatmul.msk.bf16.gmra.mxu1 %vm107_vm0, %v1636_v43  ;;  %v820_v42 = vadd.f32 %v2116_v50, %v735_v27  ;;  %v2160_v21 = vpop.f32.mrf.mxu3 }
 0x16c   :  { %v883_v56 = vmax.f32 %v819_v36, 0.0 }
 0x16d   :  { %v884_v57 = vmax.f32 %v820_v42, 0.0 }
 0x16f   :  { %v647_v30 = vpop.f32.mrf.mxu0 }
 0x170   :  { %v648_v38 = vadd.f32 %v647_v30, %v1978_v51  ;;  %v736_v40 = vpop.f32.mrf.mxu1  ;;  %v1637_v51 = vld [vmem:[%s2431_s2 + $0x50] sm:$0xff] }
 0x171   :  { %v737_v45 = vadd.f32 %v736_v40, %v1980_v52 }
 0x172   :  { %v821_v49 = vadd.f32 %v2113_v48, %v648_v38 }
 0x173   :  { %v822_v54 = vadd.f32 %v2116_v50, %v737_v45 }
 0x174   :  { %v885_v46 = vmax.f32 %v821_v49, 0.0 }
 0x175   :  { %v886_v58 = vmax.f32 %v822_v54, 0.0  ;;  %v2169_v54 = vpop.f32.mrf.mxu2 }
 0x176   :  { %v945_v47 = vpack.c.bf16 %v885_v46, %v883_v56 }
 0x177   :  { %v650_v35 = vpop.f32.mrf.mxu0  ;;  %v946_v37 = vpack.c.bf16 %v886_v58, %v884_v57 }
 0x178   :  { %v739_v52 = vpop.f32.mrf.mxu1  ;;  %1120 = vmatmul.bf16.gmra.mxu2 %v945_v47  ;;  %v651_v7 = vadd.f32 %v650_v35, %v2005_v61 }
 0x179   :  { %1209 = vmatmul.bf16.gmra.mxu3 %v946_v37  ;;  %v740_v8 = vadd.f32 %v739_v52, %v2007_v63 }
 0x17a   :  { %1529 = vmatmul.msk.bf16.gmra.mxu0 %vm107_vm0, %v1637_v51  ;;  %v823_v15 = vadd.f32 %v2113_v48, %v651_v7 }
 0x17b   :  { %1545 = vmatmul.msk.bf16.gmra.mxu1 %vm107_vm0, %v1637_v51  ;;  %v824_v44 = vadd.f32 %v2116_v50, %v740_v8 }
 0x17c   :  { %v887_v30 = vmax.f32 %v823_v15, 0.0 }
 0x17d   :  { %v888_v36 = vmax.f32 %v824_v44, 0.0  ;;  %v2183_v8 = vpop.f32.mrf.mxu2 }
 0x17f   :  { %v652_v9 = vpop.f32.mrf.mxu0 }
 0x180   :  { %v653_v43 = vadd.f32 %v652_v9, %v2020_v4  ;;  %v741_v20 = vpop.f32.mrf.mxu1  ;;  %v1638_v4 = vld [vmem:[%s2431_s2 + $0x58] sm:$0xff] }
 0x181   :  { %v742_v23 = vadd.f32 %v741_v20, %v2022_v5  ;;  %v2172_v5 = vpop.f32.mrf.mxu3 }
 0x182   :  { %v825_v27 = vadd.f32 %v2113_v48, %v653_v43 }
 0x183   :  { %v826_v61 = vadd.f32 %v2116_v50, %v742_v23 }
 0x184   :  { %v889_v63 = vmax.f32 %v825_v27, 0.0 }
 0x185   :  { %v890_v38 = vmax.f32 %v826_v61, 0.0 }
 0x186   :  { %v947_v40 = vpack.c.bf16 %v889_v63, %v887_v30  ;;  %v2194_v30 = vpop.f32.mrf.mxu2 }
 0x187   :  { %v655_v42 = vpop.f32.mrf.mxu0  ;;  %v948_v45 = vpack.c.bf16 %v890_v38, %v888_v36 }
 0x188   :  { %v744_v49 = vpop.f32.mrf.mxu1  ;;  %1125 = vmatmul.bf16.gmra.mxu2 %v947_v40  ;;  %v656_v56 = vadd.f32 %v655_v42, %v2042_v13 }
 0x189   :  { %1214 = vmatmul.bf16.gmra.mxu3 %v948_v45  ;;  %v745_v46 = vadd.f32 %v744_v49, %v2046_v14  ;;  %v2185_v15 = vpop.f32.mrf.mxu3 }
 0x18a   :  { %1530 = vmatmul.msk.bf16.gmra.mxu0 %vm107_vm0, %v1638_v4  ;;  %v827_v58 = vadd.f32 %v2113_v48, %v656_v56 }
 0x18b   :  { %1546 = vmatmul.msk.bf16.gmra.mxu1 %vm107_vm0, %v1638_v4  ;;  %v828_v35 = vadd.f32 %v2116_v50, %v745_v46 }
 0x18c   :  { %v891_v9 = vmax.f32 %v827_v58, 0.0 }
 0x18d   :  { %v892_v14 = vmax.f32 %v828_v35, 0.0 }
 0x18e   :  { %v2207_v35 = vpop.f32.mrf.mxu2 }
 0x18f   :  { %v657_v57 = vpop.f32.mrf.mxu0 }
 0x190   :  { %v658_v47 = vadd.f32 %v657_v57, %v2057_v18  ;;  %v746_v51 = vpop.f32.mrf.mxu1  ;;  %v1639_v18 = vld [vmem:[%s2431_s2 + $0x60] sm:$0xff] }
 0x191   :  { %v747_v37 = vadd.f32 %v746_v51, %v2059_v19  ;;  %v2196_v63 = vpop.f32.mrf.mxu3 }
 0x192   :  { %v829_v52 = vadd.f32 %v2113_v48, %v658_v47  ;;  %v1640_v47 = vld [vmem:[%s2431_s2 + $0x68] sm:$0xff] }
 0x193   :  { %v830_v7 = vadd.f32 %v2116_v50, %v747_v37 }
 0x194   :  { %v893_v13 = vmax.f32 %v829_v52, 0.0 }
 0x195   :  { %v894_v43 = vmax.f32 %v830_v7, 0.0 }
 0x196   :  { %v949_v20 = vpack.c.bf16 %v893_v13, %v891_v9 }
 0x197   :  { %v660_v44 = vpop.f32.mrf.mxu0  ;;  %v950_v23 = vpack.c.bf16 %v894_v43, %v892_v14 }
 0x198   :  { %v749_v19 = vpop.f32.mrf.mxu1  ;;  %1130 = vmatmul.bf16.gmra.mxu2 %v949_v20  ;;  %v661_v27 = vadd.f32 %v660_v44, %v2083_v28  ;;  %v2219_v44 = vpop.f32.mrf.mxu2 }
 0x199   :  { %1219 = vmatmul.bf16.gmra.mxu3 %v950_v23  ;;  %v750_v61 = vadd.f32 %v749_v19, %v2085_v29 }
 0x19a   :  { %1531 = vmatmul.msk.bf16.gmra.mxu0 %vm107_vm0, %v1639_v18  ;;  %v831_v38 = vadd.f32 %v2113_v48, %v661_v27 }
 0x19b   :  { %1547 = vmatmul.msk.bf16.gmra.mxu1 %vm107_vm0, %v1639_v18  ;;  %v832_v42 = vadd.f32 %v2116_v50, %v750_v61 }
 0x19c   :  { %v895_v56 = vmax.f32 %v831_v38, 0.0 }
 0x19d   :  { %v896_v46 = vmax.f32 %v832_v42, 0.0 }
 0x19f   :  { %v662_v36 = vpop.f32.mrf.mxu0 }
 0x1a0   :  { %v663_v40 = vadd.f32 %v662_v36, %v2096_v33  ;;  %v751_v4 = vpop.f32.mrf.mxu1  ;;  %v2230_v42 = vpop.f32.mrf.mxu2 }
 0x1a1   :  { %v752_v45 = vadd.f32 %v751_v4, %v2098_v34  ;;  %v2209_v34 = vpop.f32.mrf.mxu3 }
 0x1a2   :  { %v833_v49 = vadd.f32 %v2113_v48, %v663_v40 }
 0x1a3   :  { %v834_v28 = vadd.f32 %v2116_v50, %v752_v45 }
 0x1a4   :  { %v897_v29 = vmax.f32 %v833_v49, 0.0 }
 0x1a5   :  { %v898_v57 = vmax.f32 %v834_v28, 0.0 }
 0x1a6   :  { %v951_v58 = vpack.c.bf16 %v897_v29, %v895_v56 }
 0x1a7   :  { %v665_v51 = vpop.f32.mrf.mxu0  ;;  %v952_v33 = vpack.c.bf16 %v898_v57, %v896_v46 }
 0x1a8   :  { %v754_v37 = vpop.f32.mrf.mxu1  ;;  %1135 = vmatmul.bf16.gmra.mxu2 %v951_v58  ;;  %v666_v52 = vadd.f32 %v665_v51, %v1982_v53 }
 0x1a9   :  { %1224 = vmatmul.bf16.gmra.mxu3 %v952_v33  ;;  %v755_v7 = vadd.f32 %v754_v37, %v1987_v55  ;;  %v2222_v19 = vpop.f32.mrf.mxu3 }
 0x1aa   :  { %1532 = vmatmul.msk.bf16.gmra.mxu0 %vm107_vm0, %v1640_v47  ;;  %v835_v13 = vadd.f32 %v2113_v48, %v666_v52 }
 0x1ab   :  { %1548 = vmatmul.msk.bf16.gmra.mxu1 %vm107_vm0, %v1640_v47  ;;  %v836_v20 = vadd.f32 %v2116_v50, %v755_v7 }
 0x1ac   :  { %v899_v27 = vmax.f32 %v835_v13, 0.0 }
 0x1ad   :  { %v900_v61 = vmax.f32 %v836_v20, 0.0 }
 0x1af   :  { %v667_v9 = vpop.f32.mrf.mxu0 }
 0x1b0   :  { %v668_v14 = vadd.f32 %v667_v9, %v2000_v59  ;;  %v756_v43 = vpop.f32.mrf.mxu1  ;;  %v1641_v59 = vld [vmem:[%s2431_s2 + $0x70] sm:$0xff]  ;;  %v2242_v9 = vpop.f32.mrf.mxu2 }
 0x1b1   :  { %v757_v18 = vadd.f32 %v756_v43, %v2009_v0  ;;  %v2233_v49 = vpop.f32.mrf.mxu3 }
 0x1b2   :  { %v837_v23 = vadd.f32 %v2113_v48, %v668_v14 }
 0x1b3   :  { %v838_v53 = vadd.f32 %v2116_v50, %v757_v18 }
 0x1b4   :  { %v901_v55 = vmax.f32 %v837_v23, 0.0 }
 0x1b5   :  { %v902_v36 = vmax.f32 %v838_v53, 0.0 }
 0x1b6   :  { %v953_v38 = vpack.c.bf16 %v901_v55, %v899_v27 }
 0x1b7   :  { %v670_v40 = vpop.f32.mrf.mxu0  ;;  %v954_v4 = vpack.c.bf16 %v902_v36, %v900_v61 }
 0x1b8   :  { %v759_v0 = vpop.f32.mrf.mxu1  ;;  %1140 = vmatmul.bf16.gmra.mxu2 %v953_v38  ;;  %v671_v45 = vadd.f32 %v670_v40, %v2013_v1  ;;  %v2253_v53 = vpop.f32.mrf.mxu2 }
 0x1b9   :  { %1229 = vmatmul.bf16.gmra.mxu3 %v954_v4  ;;  %v760_v28 = vadd.f32 %v759_v0, %v2018_v3  ;;  %v2247_v13 = vpop.f32.mrf.mxu3 }
 0x1ba   :  { %1533 = vmatmul.msk.bf16.gmra.mxu0 %vm107_vm0, %v1641_v59  ;;  %v839_v29 = vadd.f32 %v2113_v48, %v671_v45 }
 0x1bb   :  { %1549 = vmatmul.msk.bf16.gmra.mxu1 %vm107_vm0, %v1641_v59  ;;  %v840_v58 = vadd.f32 %v2116_v50, %v760_v28 }
 0x1bc   :  { %v903_v37 = vmax.f32 %v839_v29, 0.0 }
 0x1bd   :  { %v904_v52 = vmax.f32 %v840_v58, 0.0 }
 0x1bf   :  { %v672_v56 = vpop.f32.mrf.mxu0 }
 0x1c0   :  { %v673_v46 = vadd.f32 %v672_v56, %v2038_v10  ;;  %v761_v57 = vpop.f32.mrf.mxu1  ;;  %v1642_v10 = vld [vmem:[%s2431_s2 + $0x78] sm:$0xff] }
 0x1c1   :  { %v762_v47 = vadd.f32 %v761_v57, %v2040_v12  ;;  %v2257_v36 = vpop.f32.mrf.mxu3 }
 0x1c2   :  { %v841_v51 = vadd.f32 %v2113_v48, %v673_v46 }
 0x1c3   :  { %v842_v33 = vadd.f32 %v2116_v50, %v762_v47 }
 0x1c4   :  { %v905_v1 = vmax.f32 %v841_v51, 0.0 }
 0x1c5   :  { %v906_v7 = vmax.f32 %v842_v33, 0.0 }
 0x1c6   :  { %v955_v3 = vpack.c.bf16 %v905_v1, %v903_v37 }
 0x1c7   :  { %v675_v14 = vpop.f32.mrf.mxu0  ;;  %v956_v43 = vpack.c.bf16 %v906_v7, %v904_v52 }
 0x1c8   :  { %v764_v12 = vpop.f32.mrf.mxu1  ;;  %1145 = vmatmul.bf16.gmra.mxu2 %v955_v3  ;;  %v676_v20 = vadd.f32 %v675_v14, %v2051_v16 }
 0x1c9   :  { %1234 = vmatmul.bf16.gmra.mxu3 %v956_v43  ;;  %v765_v18 = vadd.f32 %v764_v12, %v2054_v17  ;;  %v2265_v57 = vpop.f32.mrf.mxu3 }
 0x1ca   :  { %1534 = vmatmul.msk.bf16.gmra.mxu0 %vm107_vm0, %v1642_v10  ;;  %v843_v27 = vadd.f32 %v2113_v48, %v676_v20 }
 0x1cb   :  { %1550 = vmatmul.msk.bf16.gmra.mxu1 %vm107_vm0, %v1642_v10  ;;  %v844_v38 = vadd.f32 %v2116_v50, %v765_v18 }
 0x1cc   :  { %v907_v4 = vmax.f32 %v843_v27, 0.0 }
 0x1cd   :  { %v908_v0 = vmax.f32 %v844_v38, 0.0 }
 0x1cf   :  { %v677_v23 = vpop.f32.mrf.mxu0 }
 0x1d0   :  { %v678_v55 = vadd.f32 %v677_v23, %v2073_v24  ;;  %v766_v61 = vpop.f32.mrf.mxu1  ;;  %v2263_v24 = vpop.f32.mrf.mxu2 }
 0x1d1   :  { %v767_v59 = vadd.f32 %v766_v61, %v2075_v25  ;;  %v2277_v43 = vpop.f32.mrf.mxu3 }
 0x1d2   :  { %v845_v40 = vadd.f32 %v2113_v48, %v678_v55 }
 0x1d3   :  { %v846_v16 = vadd.f32 %v2116_v50, %v767_v59 }
 0x1d4   :  { %v909_v17 = vmax.f32 %v845_v40, 0.0 }
 0x1d5   :  { %v910_v45 = vmax.f32 %v846_v16, 0.0 }
 0x1d6   :  { %v957_v28 = vpack.c.bf16 %v909_v17, %v907_v4 }
 0x1d7   :  { %v680_v56 = vpop.f32.mrf.mxu0  ;;  %v958_v29 = vpack.c.bf16 %v910_v45, %v908_v0 }
 0x1d8   :  { %v769_v46 = vpop.f32.mrf.mxu1  ;;  %1150 = vmatmul.bf16.gmra.mxu2 %v957_v28  ;;  %v681_v25 = vadd.f32 %v680_v56, %v2092_v31  ;;  %v2275_v10 = vpop.f32.mrf.mxu2 }
 0x1d9   :  { %1239 = vmatmul.bf16.gmra.mxu3 %v958_v29  ;;  %v770_v58 = vadd.f32 %v769_v46, %v2094_v32 }
 0x1da   :  { %v847_v51 = vadd.f32 %v2113_v48, %v681_v25 }
 0x1db   :  { %v848_v1 = vadd.f32 %v2116_v50, %v770_v58 }
 0x1dc   :  { %v911_v14 = vmax.f32 %v847_v51, 0.0 }
 0x1dd   :  { %v912_v32 = vmax.f32 %v848_v1, 0.0 }
 0x1df   :  { %v682_v47 = vpop.f32.mrf.mxu0 }
 0x1e0   :  { %v683_v33 = vadd.f32 %v682_v47, %v2103_v39  ;;  %v771_v37 = vpop.f32.mrf.mxu1 }
 0x1e1   :  { %v772_v52 = vadd.f32 %v771_v37, %v2105_v41  ;;  %v2282_v41 = vld [vmem:[%s2436_s7] ss:$0 sm:$0xff]  ;;  %s1691_s7 = smov [#allocation2]  }
 0x1e2   :  { %v849_v7 = vadd.f32 %v2113_v48, %v683_v33  ;;  %s1353_s25 = sshll.u32 %s1691_s7, 4  ;;  %s1354_s25 = int_to_ptr.vmem [resolvable:$true] %s1353_s25 }
 0x1e3   :  { %v850_v3 = vadd.f32 %v2116_v50, %v772_v52 }
 0x1e4   :  { %v913_v31 = vmax.f32 %v849_v7, 0.0 }
 0x1e5   :  { %v914_v12 = vmax.f32 %v850_v3, 0.0 }
 0x1e6   :  { %v959_v20 = vpack.c.bf16 %v913_v31, %v911_v14 }
 0x1e7   :  { %v685_v18 = vpop.f32.mrf.mxu0  ;;  %v960_v39 = vpack.c.bf16 %v914_v12, %v912_v32 }
 0x1e8   :  { %v774_v23 = vpop.f32.mrf.mxu1  ;;  %1155 = vmatmul.bf16.gmra.mxu2 %v959_v20  ;;  %v686_v55 = vadd.f32 %v685_v18, %v2122_v2 }
 0x1e9   :  { %1244 = vmatmul.bf16.gmra.mxu3 %v960_v39  ;;  %v775_v59 = vadd.f32 %v774_v23, %v2125_v6 }
 0x1ea   :  { %v851_v4 = vadd.f32 %v2113_v48, %v686_v55 }
 0x1eb   :  { %v1116_v27 = vpop.f32.mrf.mxu2  ;;  %v852_v45 = vadd.f32 %v2116_v50, %v775_v59 }
 0x1ec   :  { %v1117_v61 = vadd.f32 %v2282_v41, %v1116_v27  ;;  %v1205_v38 = vpop.f32.mrf.mxu3  ;;  %v915_v46 = vmax.f32 %v851_v4, 0.0 }
 0x1ed   :  { %v916_v47 = vmax.f32 %v852_v45, 0.0 }
 0x1ee   :  { %v2287_v40 = vadd.f32 %v1205_v38, %v1117_v61 }
 0x1ef   :  { %v687_v16 = vpop.f32.mrf.mxu0 }
 0x1f0   :  { %v688_v17 = vadd.f32 %v687_v16, %v2133_v22  ;;  %v776_v0 = vpop.f32.mrf.mxu1 }
 0x1f1   :  { %v777_v28 = vadd.f32 %v776_v0, %v2136_v26 }
 0x1f2   :  { %v853_v56 = vadd.f32 %v2113_v48, %v688_v17 }
 0x1f3   :  { %v854_v2 = vadd.f32 %v2116_v50, %v777_v28  ;;  %v1118_v29 = vpop.f32.mrf.mxu2 }
 0x1f4   :  { %v917_v25 = vmax.f32 %v853_v56, 0.0  ;;  %v1119_v6 = vadd.f32 %v2282_v41, %v1118_v29  ;;  %v1207_v58 = vpop.f32.mrf.mxu3 }
 0x1f5   :  { %v918_v51 = vmax.f32 %v854_v2, 0.0 }
 0x1f6   :  { %v2296_v33 = vadd.f32 %v1207_v58, %v1119_v6  ;;  %v961_v22 = vpack.c.bf16 %v917_v25, %v915_v46 }
 0x1f7   :  { %v690_v37 = vpop.f32.mrf.mxu0  ;;  %v962_v1 = vpack.c.bf16 %v918_v51, %v916_v47 }
 0x1f8   :  { %v779_v52 = vpop.f32.mrf.mxu1  ;;  %1160 = vmatmul.bf16.gmra.mxu2 %v961_v22  ;;  %v691_v7 = vadd.f32 %v690_v37, %v2145_v60 }
 0x1f9   :  { %1249 = vmatmul.bf16.gmra.mxu3 %v962_v1  ;;  %v780_v31 = vadd.f32 %v779_v52, %v2150_v62 }
 0x1fa   :  { %v855_v20 = vadd.f32 %v2113_v48, %v691_v7 }
 0x1fb   :  { %v1121_v26 = vpop.f32.mrf.mxu2  ;;  %v856_v23 = vadd.f32 %v2116_v50, %v780_v31 }
 0x1fc   :  { %v1122_v3 = vadd.f32 %v2282_v41, %v1121_v26  ;;  %v1210_v14 = vpop.f32.mrf.mxu3  ;;  %v919_v38 = vmax.f32 %v855_v20, 0.0 }
 0x1fd   :  { %v920_v4 = vmax.f32 %v856_v23, 0.0 }
 0x1fe   :  { %v2301_v32 = vadd.f32 %v1210_v14, %v1122_v3 }
 0x1ff   :  { %v692_v12 = vpop.f32.mrf.mxu0 }
 0x200   :  { %v693_v18 = vadd.f32 %v692_v12, %v2156_v11  ;;  %v781_v39 = vpop.f32.mrf.mxu1 }
 0x201   :  { %v782_v27 = vadd.f32 %v781_v39, %v2160_v21 }
 0x202   :  { %v857_v55 = vadd.f32 %v2113_v48, %v693_v18 }
 0x203   :  { %v858_v60 = vadd.f32 %v2116_v50, %v782_v27  ;;  %v1123_v61 = vpop.f32.mrf.mxu2 }
 0x204   :  { %v921_v59 = vmax.f32 %v857_v55, 0.0  ;;  %v1124_v62 = vadd.f32 %v2282_v41, %v1123_v61  ;;  %v1212_v16 = vpop.f32.mrf.mxu3 }
 0x205   :  { %v922_v17 = vmax.f32 %v858_v60, 0.0 }
 0x206   :  { %v2310_v0 = vadd.f32 %v1212_v16, %v1124_v62  ;;  %v963_v11 = vpack.c.bf16 %v921_v59, %v919_v38 }
 0x207   :  { %v695_v45 = vpop.f32.mrf.mxu0  ;;  %v964_v28 = vpack.c.bf16 %v922_v17, %v920_v4 }
 0x208   :  { %v784_v56 = vpop.f32.mrf.mxu1  ;;  %1165 = vmatmul.bf16.gmra.mxu2 %v963_v11  ;;  %v696_v2 = vadd.f32 %v695_v45, %v2169_v54 }
 0x209   :  { %1254 = vmatmul.bf16.gmra.mxu3 %v964_v28  ;;  %v785_v25 = vadd.f32 %v784_v56, %v2172_v5 }
 0x20a   :  { %v859_v47 = vadd.f32 %v2113_v48, %v696_v2 }
 0x20b   :  { %v1126_v21 = vpop.f32.mrf.mxu2  ;;  %v860_v37 = vadd.f32 %v2116_v50, %v785_v25 }
 0x20c   :  { %v1127_v29 = vadd.f32 %v2282_v41, %v1126_v21  ;;  %v1215_v46 = vpop.f32.mrf.mxu3  ;;  %v923_v7 = vmax.f32 %v859_v47, 0.0 }
 0x20d   :  { %v924_v31 = vmax.f32 %v860_v37, 0.0 }
 0x20e   :  { %v2315_v6 = vadd.f32 %v1215_v46, %v1127_v29 }
 0x20f   :  { %v697_v58 = vpop.f32.mrf.mxu0 }
 0x210   :  { %v698_v51 = vadd.f32 %v697_v58, %v2183_v8  ;;  %v786_v22 = vpop.f32.mrf.mxu1 }
 0x211   :  { %v787_v1 = vadd.f32 %v786_v22, %v2185_v15 }
 0x212   :  { %v861_v52 = vadd.f32 %v2113_v48, %v698_v51 }
 0x213   :  { %v862_v54 = vadd.f32 %v2116_v50, %v787_v1  ;;  %v1128_v26 = vpop.f32.mrf.mxu2 }
 0x214   :  { %v925_v3 = vmax.f32 %v861_v52, 0.0  ;;  %v1129_v5 = vadd.f32 %v2282_v41, %v1128_v26  ;;  %v1217_v14 = vpop.f32.mrf.mxu3 }
 0x215   :  { %v926_v12 = vmax.f32 %v862_v54, 0.0 }
 0x216   :  { %v2324_v20 = vadd.f32 %v1217_v14, %v1129_v5  ;;  %v965_v8 = vpack.c.bf16 %v925_v3, %v923_v7  ;;  %v1285_v7 = vmax.f32 %v2287_v40, 0.0 }
 0x217   :  { %v700_v18 = vpop.f32.mrf.mxu0  ;;  %v966_v39 = vpack.c.bf16 %v926_v12, %v924_v31 }
 0x218   :  { %v789_v23 = vpop.f32.mrf.mxu1  ;;  %1170 = vmatmul.bf16.gmra.mxu2 %v965_v8  ;;  %v701_v27 = vadd.f32 %v700_v18, %v2194_v30 }
 0x219   :  { %1259 = vmatmul.bf16.gmra.mxu3 %v966_v39  ;;  %v790_v61 = vadd.f32 %v789_v23, %v2196_v63 }
 0x21a   :  { %v863_v62 = vadd.f32 %v2113_v48, %v701_v27 }
 0x21b   :  { %v1131_v15 = vpop.f32.mrf.mxu2  ;;  %v864_v17 = vadd.f32 %v2116_v50, %v790_v61 }
 0x21c   :  { %v1132_v55 = vadd.f32 %v2282_v41, %v1131_v15  ;;  %v1220_v60 = vpop.f32.mrf.mxu3  ;;  %v927_v56 = vmax.f32 %v863_v62, 0.0 }
 0x21d   :  { %v928_v29 = vmax.f32 %v864_v17, 0.0 }
 0x21e   :  { %v2329_v38 = vadd.f32 %v1220_v60, %v1132_v55 }
 0x21f   :  { %v702_v59 = vpop.f32.mrf.mxu0 }
 0x220   :  { %v703_v16 = vadd.f32 %v702_v59, %v2207_v35  ;;  %v791_v4 = vpop.f32.mrf.mxu1 }
 0x221   :  { %v792_v11 = vadd.f32 %v791_v4, %v2209_v34 }
 0x222   :  { %v865_v45 = vadd.f32 %v2113_v48, %v703_v16 }
 0x223   :  { %v866_v30 = vadd.f32 %v2116_v50, %v792_v11  ;;  %v1133_v28 = vpop.f32.mrf.mxu2 }
 0x224   :  { %v929_v21 = vmax.f32 %v865_v45, 0.0  ;;  %v1134_v63 = vadd.f32 %v2282_v41, %v1133_v28  ;;  %v1222_v2 = vpop.f32.mrf.mxu3 }
 0x225   :  { %v930_v46 = vmax.f32 %v866_v30, 0.0 }
 0x226   :  { %v2338_v25 = vadd.f32 %v1222_v2, %v1134_v63  ;;  %v967_v35 = vpack.c.bf16 %v929_v21, %v927_v56  ;;  %v1287_v2 = vmax.f32 %v2301_v32, 0.0 }
 0x227   :  { %v705_v58 = vpop.f32.mrf.mxu0  ;;  %v968_v47 = vpack.c.bf16 %v930_v46, %v928_v29 }
 0x228   :  { %v794_v51 = vpop.f32.mrf.mxu1  ;;  %1175 = vmatmul.bf16.gmra.mxu2 %v967_v35  ;;  %v706_v22 = vadd.f32 %v705_v58, %v2219_v44 }
 0x229   :  { %1264 = vmatmul.bf16.gmra.mxu3 %v968_v47  ;;  %v795_v52 = vadd.f32 %v794_v51, %v2222_v19 }
 0x22a   :  { %v867_v3 = vadd.f32 %v2113_v48, %v706_v22 }
 0x22b   :  { %v1136_v34 = vpop.f32.mrf.mxu2  ;;  %v868_v12 = vadd.f32 %v2116_v50, %v795_v52 }
 0x22c   :  { %v1137_v37 = vadd.f32 %v2282_v41, %v1136_v34  ;;  %v1225_v1 = vpop.f32.mrf.mxu3  ;;  %v931_v23 = vmax.f32 %v867_v3, 0.0 }
 0x22d   :  { %v932_v55 = vmax.f32 %v868_v12, 0.0 }
 0x22e   :  { %v1226_v54 = vadd.f32 %v1225_v1, %v1137_v37 }
 0x22f   :  { %v707_v26 = vpop.f32.mrf.mxu0 }
 0x230   :  { %v1293_v5 = vmax.f32 %v1226_v54, 0.0  ;;  %v708_v14 = vadd.f32 %v707_v26, %v2230_v42  ;;  %v796_v31 = vpop.f32.mrf.mxu1 }
 0x231   :  { %v797_v8 = vadd.f32 %v796_v31, %v2233_v49  ;;  %v1286_v49 = vmax.f32 %v2296_v33, 0.0 }
 0x232   :  { %v2348_v44 = vmax.f32 %v1285_v7, %v1293_v5  ;;  %v869_v18 = vadd.f32 %v2113_v48, %v708_v14 }
 0x233   :  { %v870_v19 = vadd.f32 %v2116_v50, %v797_v8  ;;  %v1138_v39 = vpop.f32.mrf.mxu2 }
 0x234   :  { %v933_v15 = vmax.f32 %v869_v18, 0.0  ;;  %v1139_v40 = vadd.f32 %v2282_v41, %v1138_v39  ;;  %v1227_v27 = vpop.f32.mrf.mxu3 }
 0x235   :  { %v934_v60 = vmax.f32 %v870_v19, 0.0 }
 0x236   :  { %v1228_v42 = vadd.f32 %v1227_v27, %v1139_v40  ;;  %v969_v61 = vpack.c.bf16 %v933_v15, %v931_v23  ;;  %v1289_v40 = vmax.f32 %v2315_v6, 0.0 }
 0x237   :  { %v710_v59 = vpop.f32.mrf.mxu0  ;;  %v970_v62 = vpack.c.bf16 %v934_v60, %v932_v55 }
 0x238   :  { %v1294_v16 = vmax.f32 %v1228_v42, 0.0  ;;  %v799_v4 = vpop.f32.mrf.mxu1  ;;  %1180 = vmatmul.bf16.gmra.mxu2 %v969_v61  ;;  %v711_v45 = vadd.f32 %v710_v59, %v2242_v9 }
 0x239   :  { %1269 = vmatmul.bf16.gmra.mxu3 %v970_v62  ;;  %v800_v56 = vadd.f32 %v799_v4, %v2247_v13 }
 0x23a   :  { %v2354_v17 = vmax.f32 %v1286_v49, %v1294_v16  ;;  %v871_v33 = vadd.f32 %v2113_v48, %v711_v45 }
 0x23b   :  { %v1141_v11 = vpop.f32.mrf.mxu2  ;;  %v872_v58 = vadd.f32 %v2116_v50, %v800_v56  ;;  %v1290_v56 = vmax.f32 %v2324_v20, 0.0 }
 0x23c   :  { %v1142_v30 = vadd.f32 %v2282_v41, %v1141_v11  ;;  %v1230_v28 = vpop.f32.mrf.mxu3  ;;  %v935_v22 = vmax.f32 %v871_v33, 0.0  ;;  %v1291_v33 = vmax.f32 %v2329_v38, 0.0 }
 0x23d   :  { %v936_v52 = vmax.f32 %v872_v58, 0.0 }
 0x23e   :  { %v1231_v21 = vadd.f32 %v1230_v28, %v1142_v30 }
 0x23f   :  { %v712_v63 = vpop.f32.mrf.mxu0 }
 0x240   :  { %v1295_v29 = vmax.f32 %v1231_v21, 0.0  ;;  %v713_v46 = vadd.f32 %v712_v63, %v2253_v53  ;;  %v801_v35 = vpop.f32.mrf.mxu1 }
 0x241   :  { %v802_v47 = vadd.f32 %v801_v35, %v2257_v36  ;;  %v1288_v36 = vmax.f32 %v2310_v0, 0.0 }
 0x242   :  { %v2364_v9 = vmax.f32 %v1287_v2, %v1295_v29  ;;  %v873_v51 = vadd.f32 %v2113_v48, %v713_v46 }
 0x243   :  { %v874_v13 = vadd.f32 %v2116_v50, %v802_v47  ;;  %v1143_v34 = vpop.f32.mrf.mxu2 }
 0x244   :  { %v937_v37 = vmax.f32 %v873_v51, 0.0  ;;  %v1144_v32 = vadd.f32 %v2282_v41, %v1143_v34  ;;  %v1232_v1 = vpop.f32.mrf.mxu3  ;;  %v1292_v51 = vmax.f32 %v2338_v25, 0.0 }
 0x245   :  { %v938_v54 = vmax.f32 %v874_v13, 0.0 }
 0x246   :  { %v1233_v53 = vadd.f32 %v1232_v1, %v1144_v32  ;;  %v971_v26 = vpack.c.bf16 %v937_v37, %v935_v22 }
 0x247   :  { %v715_v7 = vpop.f32.mrf.mxu0  ;;  %v972_v3 = vpack.c.bf16 %v938_v54, %v936_v52 }
 0x248   :  { %v1296_v5 = vmax.f32 %v1233_v53, 0.0  ;;  %v804_v14 = vpop.f32.mrf.mxu1  ;;  %1185 = vmatmul.bf16.gmra.mxu2 %v971_v26  ;;  %v716_v8 = vadd.f32 %v715_v7, %v2263_v24 }
 0x249   :  { %1274 = vmatmul.bf16.gmra.mxu3 %v972_v3  ;;  %v805_v39 = vadd.f32 %v804_v14, %v2265_v57 }
 0x24a   :  { %v2370_v31 = vmax.f32 %v1288_v36, %v1296_v5  ;;  %v875_v0 = vadd.f32 %v2113_v48, %v716_v8 }
 0x24b   :  { %v1146_v12 = vpop.f32.mrf.mxu2  ;;  %v876_v42 = vadd.f32 %v2116_v50, %v805_v39 }
 0x24c   :  { %v1147_v18 = vadd.f32 %v2282_v41, %v1146_v12  ;;  %v1235_v19 = vpop.f32.mrf.mxu3  ;;  %v939_v49 = vmax.f32 %v875_v0, 0.0 }
 0x24d   :  { %v940_v11 = vmax.f32 %v876_v42, 0.0 }
 0x24e   :  { %v1236_v23 = vadd.f32 %v1235_v19, %v1147_v18 }
 0x24f   :  { %v717_v15 = vpop.f32.mrf.mxu0 }
 0x250   :  { %v1297_v27 = vmax.f32 %v1236_v23, 0.0  ;;  %v718_v55 = vadd.f32 %v717_v15, %v2275_v10  ;;  %v806_v60 = vpop.f32.mrf.mxu1 }
 0x251   :  { %v807_v61 = vadd.f32 %v806_v60, %v2277_v43 }
 0x252   :  { %v2380_v24 = vmax.f32 %v1289_v40, %v1297_v27  ;;  %v877_v59 = vadd.f32 %v2113_v48, %v718_v55 }
 0x253   :  { %v878_v57 = vadd.f32 %v2116_v50, %v807_v61  ;;  %v1148_v62 = vpop.f32.mrf.mxu2 }
 0x254   :  { %v941_v16 = vmax.f32 %v877_v59, 0.0  ;;  %v1149_v6 = vadd.f32 %v2282_v41, %v1148_v62  ;;  %v1237_v4 = vpop.f32.mrf.mxu3 }
 0x255   :  { %v942_v45 = vmax.f32 %v878_v57, 0.0 }
 0x256   :  { %v1238_v10 = vadd.f32 %v1237_v4, %v1149_v6  ;;  %v973_v30 = vpack.c.bf16 %v941_v16, %v939_v49 }
 0x257   :  { %v974_v28 = vpack.c.bf16 %v942_v45, %v940_v11 }
 0x258   :  { %v1298_v43 = vmax.f32 %v1238_v10, 0.0  ;;  %1190 = vmatmul.bf16.gmra.mxu2 %v973_v30 }
 0x259   :  { %1279 = vmatmul.bf16.gmra.mxu3 %v974_v28 }
 0x25a   :  { %v2386_v21 = vmax.f32 %v1290_v56, %v1298_v43 }
 0x25b   :  { %v1151_v48 = vpop.f32.mrf.mxu2 }
 0x25c   :  { %v1152_v50 = vadd.f32 %v2282_v41, %v1151_v48  ;;  %v1240_v63 = vpop.f32.mrf.mxu3 }
 0x25e   :  { %v1241_v2 = vadd.f32 %v1240_v63, %v1152_v50 }
 0x260   :  { %v1299_v29 = vmax.f32 %v1241_v2, 0.0 }
 0x262   :  { %v2390_v46 = vmax.f32 %v1291_v33, %v1299_v29 }
 0x263   :  { %v1153_v35 = vpop.f32.mrf.mxu2 }
 0x264   :  { %v1154_v58 = vadd.f32 %v2282_v41, %v1153_v35  ;;  %v1242_v47 = vpop.f32.mrf.mxu3 }
 0x266   :  { %v1243_v20 = vadd.f32 %v1242_v47, %v1154_v58 }
 0x268   :  { %v1300_v13 = vmax.f32 %v1243_v20, 0.0 }
 0x26a   :  { %v2394_v34 = vmax.f32 %v1292_v51, %v1300_v13 }
 0x26b   :  { %v1156_v22 = vpop.f32.mrf.mxu2 }
 0x26c   :  { %v1157_v37 = vadd.f32 %v2282_v41, %v1156_v22  ;;  %v1245_v32 = vpop.f32.mrf.mxu3 }
 0x26e   :  { %v1246_v1 = vadd.f32 %v1245_v32, %v1157_v37 }
 0x270   :  { %v1301_v11 = vmax.f32 %v1246_v1, 0.0 }
 0x273   :  { %v1158_v52 = vpop.f32.mrf.mxu2 }
 0x274   :  { %v1159_v38 = vadd.f32 %v2282_v41, %v1158_v52  ;;  %v1247_v54 = vpop.f32.mrf.mxu3 }
 0x276   :  { %v1248_v53 = vadd.f32 %v1247_v54, %v1159_v38 }
 0x278   :  { %v1302_v50 = vmax.f32 %v1248_v53, 0.0 }
 0x27b   :  { %v1161_v26 = vpop.f32.mrf.mxu2 }
 0x27c   :  { %v1162_v7 = vadd.f32 %v2282_v41, %v1161_v26  ;;  %v1250_v3 = vpop.f32.mrf.mxu3 }
 0x27e   :  { %v1251_v36 = vadd.f32 %v1250_v3, %v1162_v7 }
 0x280   :  { %v1303_v20 = vmax.f32 %v1251_v36, 0.0 }
 0x283   :  { %v1163_v5 = vpop.f32.mrf.mxu2 }
 0x284   :  { %v1164_v25 = vadd.f32 %v2282_v41, %v1163_v5  ;;  %v1252_v14 = vpop.f32.mrf.mxu3 }
 0x286   :  { %v1253_v12 = vadd.f32 %v1252_v14, %v1164_v25 }
 0x288   :  { %v1304_v52 = vmax.f32 %v1253_v12, 0.0 }
 0x28b   :  { %v1166_v8 = vpop.f32.mrf.mxu2 }
 0x28c   :  { %v1167_v18 = vadd.f32 %v2282_v41, %v1166_v8  ;;  %v1255_v19 = vpop.f32.mrf.mxu3 }
 0x28e   :  { %v1256_v39 = vadd.f32 %v1255_v19, %v1167_v18 }
 0x290   :  { %v1305_v36 = vmax.f32 %v1256_v39, 0.0 }
 0x293   :  { %v1168_v23 = vpop.f32.mrf.mxu2 }
 0x294   :  { %v1169_v15 = vadd.f32 %v2282_v41, %v1168_v23  ;;  %v1257_v40 = vpop.f32.mrf.mxu3 }
 0x296   :  { %v1258_v0 = vadd.f32 %v1257_v40, %v1169_v15 }
 0x298   :  { %v1306_v19 = vmax.f32 %v1258_v0, 0.0 }
 0x29b   :  { %v1171_v27 = vpop.f32.mrf.mxu2 }
 0x29c   :  { %v1172_v55 = vadd.f32 %v2282_v41, %v1171_v27  ;;  %v1260_v60 = vpop.f32.mrf.mxu3 }
 0x29e   :  { %v2403_v42 = vadd.f32 %v1260_v60, %v1172_v55 }
 0x2a0   :  { %v1307_v60 = vmax.f32 %v2403_v42, 0.0 }
 0x2a3   :  { %v1173_v61 = vpop.f32.mrf.mxu2 }
 0x2a4   :  { %v1174_v59 = vadd.f32 %v2282_v41, %v1173_v61  ;;  %v1262_v57 = vpop.f32.mrf.mxu3 }
 0x2a6   :  { %v2406_v62 = vadd.f32 %v1262_v57, %v1174_v59 }
 0x2ab   :  { %v1176_v49 = vpop.f32.mrf.mxu2 }
 0x2ac   :  { %v1177_v16 = vadd.f32 %v2282_v41, %v1176_v49  ;;  %v1265_v6 = vpop.f32.mrf.mxu3 }
 0x2ae   :  { %v1266_v4 = vadd.f32 %v1265_v6, %v1177_v16  ;;  %v1308_v6 = vmax.f32 %v2406_v62, 0.0 }
 0x2b0   :  { %v1309_v45 = vmax.f32 %v1266_v4, 0.0 }
 0x2b2   :  { %v1325_v10 = vmax.f32 %v1301_v11, %v1309_v45 }
 0x2b3   :  { %v1178_v30 = vpop.f32.mrf.mxu2 }
 0x2b4   :  { %v1333_v28 = vmax.f32 %v2348_v44, %v1325_v10  ;;  %v1179_v56 = vadd.f32 %v2282_v41, %v1178_v30  ;;  %v1267_v43 = vpop.f32.mrf.mxu3 }
 0x2b6   :  { %1341 = vst [vmem:[#allocation2] sm:$0xff] %v1333_v28  ;;  %v1268_v48 = vadd.f32 %v1267_v43, %v1179_v56 }
 0x2b8   :  { %v1310_v63 = vmax.f32 %v1268_v48, 0.0 }
 0x2ba   :  { %v1326_v2 = vmax.f32 %v1302_v50, %v1310_v63 }
 0x2bb   :  { %v1181_v33 = vpop.f32.mrf.mxu2 }
 0x2bc   :  { %v1334_v29 = vmax.f32 %v2354_v17, %v1326_v2  ;;  %v1182_v35 = vadd.f32 %v2282_v41, %v1181_v33  ;;  %v1270_v58 = vpop.f32.mrf.mxu3 }
 0x2be   :  { %1342 = vst [vmem:[#allocation2 + $0x8] sm:$0xff] %v1334_v29  ;;  %v1271_v47 = vadd.f32 %v1270_v58, %v1182_v35 }
 0x2c0   :  { %v1311_v51 = vmax.f32 %v1271_v47, 0.0 }
 0x2c2   :  { %v1327_v13 = vmax.f32 %v1303_v20, %v1311_v51 }
 0x2c3   :  { %v1183_v44 = vpop.f32.mrf.mxu2 }
 0x2c4   :  { %v1335_v22 = vmax.f32 %v2364_v9, %v1327_v13  ;;  %v1184_v37 = vadd.f32 %v2282_v41, %v1183_v44  ;;  %v1272_v32 = vpop.f32.mrf.mxu3 }
 0x2c6   :  { %1343 = vst [vmem:[#allocation2 + $0x10] sm:$0xff] %v1335_v22  ;;  %v1273_v1 = vadd.f32 %v1272_v32, %v1184_v37 }
 0x2c8   :  { %v1312_v38 = vmax.f32 %v1273_v1, 0.0 }
 0x2ca   :  { %v1328_v54 = vmax.f32 %v1304_v52, %v1312_v38 }
 0x2cb   :  { %v1186_v17 = vpop.f32.mrf.mxu2 }
 0x2cc   :  { %v1336_v53 = vmax.f32 %v2370_v31, %v1328_v54  ;;  %v1187_v26 = vadd.f32 %v2282_v41, %v1186_v17  ;;  %v1275_v7 = vpop.f32.mrf.mxu3 }
 0x2ce   :  { %1344 = vst [vmem:[#allocation2 + $0x18] sm:$0xff] %v1336_v53  ;;  %v1276_v3 = vadd.f32 %v1275_v7, %v1187_v26 }
 0x2d0   :  { %v1313_v5 = vmax.f32 %v1276_v3, 0.0 }
 0x2d2   :  { %v1329_v25 = vmax.f32 %v1305_v36, %v1313_v5 }
 0x2d3   :  { %v1188_v9 = vpop.f32.mrf.mxu2 }
 0x2d4   :  { %v1337_v14 = vmax.f32 %v2380_v24, %v1329_v25  ;;  %v1189_v8 = vadd.f32 %v2282_v41, %v1188_v9  ;;  %v1277_v18 = vpop.f32.mrf.mxu3 }
 0x2d6   :  { %1345 = vst [vmem:[#allocation2 + $0x20] sm:$0xff] %v1337_v14  ;;  %v1278_v12 = vadd.f32 %v1277_v18, %v1189_v8 }
 0x2d8   :  { %v1314_v23 = vmax.f32 %v1278_v12, 0.0 }
 0x2da   :  { %v1330_v15 = vmax.f32 %v1306_v19, %v1314_v23 }
 0x2db   :  { %v1191_v31 = vpop.f32.mrf.mxu2 }
 0x2dc   :  { %v1338_v40 = vmax.f32 %v2386_v21, %v1330_v15  ;;  %v1192_v27 = vadd.f32 %v2282_v41, %v1191_v31  ;;  %v1280_v55 = vpop.f32.mrf.mxu3 }
 0x2de   :  { %1346 = vst [vmem:[#allocation2 + $0x28] sm:$0xff] %v1338_v40  ;;  %v1281_v39 = vadd.f32 %v1280_v55, %v1192_v27 }
 0x2e0   :  { %v1315_v61 = vmax.f32 %v1281_v39, 0.0 }
 0x2e2   :  { %v1331_v24 = vmax.f32 %v1307_v60, %v1315_v61 }
 0x2e3   :  { %v1193_v59 = vpop.f32.mrf.mxu2 }
 0x2e4   :  { %v1339_v57 = vmax.f32 %v2390_v46, %v1331_v24  ;;  %v1194_v49 = vadd.f32 %v2282_v41, %v1193_v59  ;;  %v1282_v0 = vpop.f32.mrf.mxu3 }
 0x2e6   :  { %1347 = vst [vmem:[#allocation2 + $0x30] sm:$0xff] %v1339_v57  ;;  %v1283_v16 = vadd.f32 %v1282_v0, %v1194_v49 }
 0x2e8   :  { %v1316_v21 = vmax.f32 %v1283_v16, 0.0 }
 0x2ea   :  { %v1332_v42 = vmax.f32 %v1308_v6, %v1316_v21 }
 0x2ec   :  { %v1340_v4 = vmax.f32 %v2394_v34, %v1332_v42 }
 0x2ee   :  { %1348 = vst [vmem:[#allocation2 + $0x38] sm:$0xff] %v1340_v4 }
 0x2ef   :  { %1361 = dma.vmem_to_hbm [thread:$0]  %s1354_s25, 1024, %s1356_s1, [#allocation3], %s1692_s28, %s1692_s28, %s1693_s29  }
 0x2f0   :  { %1689 = dma.done.wait [#allocation3], 1024  }
 0x2f1   :  { %1690 = vsyncadd [#allocation3], 4294966272 }
 0x2f2   :  { %1366 = vsyncpa [#allocation3], 1 }

// kernel: tpu_custom_call.1
= control target key start
LH: loop header
LB: loop body
LE: loop exit
PB: predicated region body
PF: predicated region fallthrough
CT: control target
= control target key end

     0   :  { %s2429_s0 = inlined_call_operand.vmem [shape: f32[256,2], index: 0, kind: input, shape index: {}]   ;;  %s2430_s1 = inlined_call_operand.vmem [shape: bf16[64,64], index: 1, kind: input, shape index: {}]   ;;  %s2431_s2 = inlined_call_operand.vmem [shape: bf16[256,64], index: 2, kind: input, shape index: {}]   ;;  %s2432_s3 = inlined_call_operand.vmem [shape: bf16[2,256], index: 3, kind: input, shape index: {}]   ;;  %s2433_s4 = inlined_call_operand.vmem [shape: bf16[64,256], index: 4, kind: input, shape index: {}]   ;;  %s2434_s5 = inlined_call_operand.vmem [shape: f32[1,256], index: 5, kind: input, shape index: {}]   ;;  %s2435_s6 = inlined_call_operand.vmem [shape: bf16[256,128], index: 6, kind: input, shape index: {}]   ;;  %s2436_s7 = inlined_call_operand.vmem [shape: f32[1,128], index: 7, kind: input, shape index: {}]   ;;  %s2437_s8 = inlined_call_operand.hbm [shape: f32[64,128], index: 8, kind: output, shape index: {}]  }
   0x1   :  { %v1409_v0 = vld [vmem:[%s2433_s4 + $0x30] sm:$0xf]  ;;  %v1626_v1 = vld [vmem:[%s2433_s4 + $0x34] sm:$0xf0]  ;;  %v1625_v2 = vld [vmem:[%s2433_s4 + $0x34] sm:$0xf] }
   0x2   :  { %v1410_v3 = vor.u32 %v1626_v1, %v1409_v0  ;;  %v1411_v4 = vld [vmem:[%s2433_s4 + $0x38] sm:$0xf0]  ;;  %v1401_v5 = vld [vmem:[%s2433_s4 + $0x20] sm:$0xf]  ;;  %v1624_v6 = vld [vmem:[%s2433_s4 + $0x24] sm:$0xf0] }
   0x3   :  { %v1414_v7 = vor.u32 %v1625_v2, %v1411_v4  ;;  %v1623_v8 = vld [vmem:[%s2433_s4 + $0x24] sm:$0xf]  ;;  %v1403_v9 = vld [vmem:[%s2433_s4 + $0x28] sm:$0xf0]  ;;  %v1402_v10 = vor.u32 %v1624_v6, %v1401_v5  ;;  %v1393_v12 = vld [vmem:[%s2433_s4 + $0x10] sm:$0xf] }
   0x4   :  { %124 = vmatpush.bf16.msra.mxu0 %v1410_v3  ;;  %v1406_v11 = vor.u32 %v1623_v8, %v1403_v9  ;;  %v1622_v13 = vld [vmem:[%s2433_s4 + $0x14] sm:$0xf0]  ;;  %v1621_v14 = vld [vmem:[%s2433_s4 + $0x14] sm:$0xf]  ;;  %v1395_v15 = vld [vmem:[%s2433_s4 + $0x18] sm:$0xf0] }
   0x5   :  { %153 = vmatpush.bf16.msra.mxu1 %v1414_v7 }
   0x6   :  { %13 = vsyncpa [#allocation3], 0  ;;  %v1394_v16 = vor.u32 %v1622_v13, %v1393_v12  ;;  %v1398_v17 = vor.u32 %v1621_v14, %v1395_v15  ;;  %v1385_v18 = vld [vmem:[%s2433_s4] sm:$0xf]  ;;  %v1620_v19 = vld [vmem:[%s2433_s4 + $0x4] sm:$0xf0] }
   0x7   :  { %v1619_v20 = vld [vmem:[%s2433_s4 + $0x4] sm:$0xf]  ;;  %v1387_v21 = vld [vmem:[%s2433_s4 + $0x8] sm:$0xf0]  ;;  %v1386_v22 = vor.u32 %v1620_v19, %v1385_v18  ;;  %vm107_vm0 = vcmask 523264   ;;  %vm320_vm1 = vcmask 1040384  }
   0x8   :  { %125 = vmatpush.bf16.msra.mxu0 %v1402_v10  ;;  %v1390_v23 = vor.u32 %v1619_v20, %v1387_v21  ;;  %v1615_v24 = vld [vmem:[%s2430_s1] sm:$0xff]  ;;  %v1616_v25 = vld [vmem:[%s2430_s1 + $0x8] sm:$0xff]  ;;  %v1617_v31 = vld [vmem:[%s2430_s1 + $0x10] sm:$0xff]  ;;  %vm271_vm2 = vcmask 15360   ;;  %s1692_s28 = smov 128   ;;  %s1693_s29 = smov 8  }
   0x9   :  { %154 = vmatpush.bf16.msra.mxu1 %v1406_v11  ;;  %v266_v26 = vld [vmem:[%s2432_s3] sm:$0x3]  ;;  %v1618_v32 = vld [vmem:[%s2430_s1 + $0x18] sm:$0xff]  ;;  %v219_v34 = vld [vmem:[%s2429_s0 + $0x8] sm:$0xff]  ;;  %s1355_s1 = sshll.u32 %s2437_s8, 4  ;;  %s1356_s1 = int_to_ptr.hbm [resolvable:$true] %s1355_s1 }
   0xa   :  { %268 = vst [vmem:[#allocation1] ss:$9 sm:$0xff] %v266_v26  ;;  %v218_v33 = vld [vmem:[%s2429_s0] sm:$0xff]  ;;  %v220_v36 = vld [vmem:[%s2429_s0 + $0x10] sm:$0xff]  ;;  %v221_v37 = vld [vmem:[%s2429_s0 + $0x18] sm:$0xff] }
   0xb   :  { %v250_v35 = vpack.c.bf16 %v219_v34, %v218_v33  ;;  %v251_v38 = vpack.c.bf16 %v221_v37, %v220_v36  ;;  %v222_v39 = vld [vmem:[%s2429_s0 + $0x20] sm:$0xff]  ;;  %v223_v40 = vld [vmem:[%s2429_s0 + $0x28] sm:$0xff]  ;;  %v228_v42 = vld [vmem:[%s2429_s0 + $0x50] sm:$0xff] }
   0xc   :  { %126 = vmatpush.bf16.msra.mxu0 %v1394_v16  ;;  %v252_v41 = vpack.c.bf16 %v223_v40, %v222_v39  ;;  %v229_v43 = vld [vmem:[%s2429_s0 + $0x58] sm:$0xff]  ;;  %v224_v46 = vld [vmem:[%s2429_s0 + $0x30] sm:$0xff]  ;;  %v230_v52 = vld [vmem:[%s2429_s0 + $0x60] sm:$0xff] }
   0xd   :  { %155 = vmatpush.bf16.msra.mxu1 %v1398_v17  ;;  %v255_v44 = vpack.c.bf16 %v229_v43, %v228_v42  ;;  %v225_v47 = vld [vmem:[%s2429_s0 + $0x38] sm:$0xff]  ;;  %v231_v53 = vld [vmem:[%s2429_s0 + $0x68] sm:$0xff]  ;;  %v226_v56 = vld [vmem:[%s2429_s0 + $0x40] sm:$0xff] }
   0xe   :  { %v253_v49 = vpack.c.bf16 %v225_v47, %v224_v46  ;;  %v256_v54 = vpack.c.bf16 %v231_v53, %v230_v52  ;;  %v227_v57 = vld [vmem:[%s2429_s0 + $0x48] sm:$0xff]  ;;  %v232_v62 = vld [vmem:[%s2429_s0 + $0x70] sm:$0xff]  ;;  %v233_v63 = vld [vmem:[%s2429_s0 + $0x78] sm:$0xff] }
   0xf   :  { %v254_v59 = vpack.c.bf16 %v227_v57, %v226_v56  ;;  %v257_v0 = vpack.c.bf16 %v233_v63, %v232_v62  ;;  %v234_v5 = vld [vmem:[%s2429_s0 + $0x80] sm:$0xff]  ;;  %v235_v6 = vld [vmem:[%s2429_s0 + $0x88] sm:$0xff]  ;;  %v236_v14 = vld [vmem:[%s2429_s0 + $0x90] sm:$0xff] }
  0x10   :  { %127 = vmatpush.bf16.msra.mxu0 %v1386_v22  ;;  %v258_v7 = vpack.c.bf16 %v235_v6, %v234_v5  ;;  %v237_v15 = vld [vmem:[%s2429_s0 + $0x98] sm:$0xff]  ;;  %v238_v26 = vld [vmem:[%s2429_s0 + $0xa0] sm:$0xff]  ;;  %v1629_v36 = vld [vmem:[%s2431_s2 + $0x10] sm:$0xff] }
  0x11   :  { %156 = vmatpush.bf16.msra.mxu1 %v1390_v23  ;;  %v269_v27 = vld [vmem:[#allocation1] sm:$0xff]  ;;  %v270_v28 = vld [vmem:[#allocation1 + $0x9] sm:$0xff]  ;;  %v1650_v16 = vld [vmem:[%s2435_s6 + $0x38] sm:$0xff]  ;;  %v259_v18 = vpack.c.bf16 %v237_v15, %v236_v14 }
  0x12   :  { %v321_v29 = vsel %vm320_vm1, %v269_v27, 0  ;;  %v323_v30 = vsel %vm320_vm1, %v270_v28, 0  ;;  %v239_v27 = vld [vmem:[%s2429_s0 + $0xa8] sm:$0xff]  ;;  %v241_v33 = vld [vmem:[%s2429_s0 + $0xb8] sm:$0xff]  ;;  %v242_v40 = vld [vmem:[%s2429_s0 + $0xc0] sm:$0xff] }
  0x13   :  { %1415 = vmatmul.msk.bf16.vlgmr.msra.gmra.mxu0 %vm107_vm0, %v1615_v24  ;;  %1659 = vmatpush.bf16.msra.mxu2 %v321_v29  ;;  %v260_v28 = vpack.c.bf16 %v239_v27, %v238_v26  ;;  %v1656_v39 = vld [vmem:[%s2435_s6 + $0x68] sm:$0xff]  ;;  %v1647_v56 = vld [vmem:[%s2435_s6 + $0x20] sm:$0xff]  ;;  %v1646_v6 = vld [vmem:[%s2435_s6 + $0x18] sm:$0xff] }
  0x14   :  { %1419 = vmatmul.msk.bf16.vlgmr.msra.gmra.mxu1 %vm107_vm0, %v1615_v24  ;;  %332 = vmatpush.bf16.msrb.mxu0 %v321_v29  ;;  %v1627_v24 = vld [vmem:[%s2431_s2] sm:$0xff]  ;;  %v1628_v29 = vld [vmem:[%s2431_s2 + $0x8] sm:$0xff]  ;;  %v1633_v15 = vld [vmem:[%s2431_s2 + $0x30] sm:$0xff] }
  0x15   :  { %421 = vmatpush.bf16.msrb.mxu1 %v323_v30  ;;  %1660 = vmatpush.bf16.msra.mxu3 %v323_v30  ;;  %v1649_v30 = vld [vmem:[%s2435_s6 + $0x30] sm:$0xff]  ;;  %v1655_v57 = vld [vmem:[%s2435_s6 + $0x60] sm:$0xff] }
  0x16   :  { %1428 = vmatmul.msk.bf16.vlgmr.msra.gmra.mxu2 %vm271_vm2, %v255_v44  ;;  %v1643_v26 = vld [vmem:[%s2435_s6] sm:$0xff] }
  0x17   :  { %1107 = vmatpush.bf16.msrb.mxu2 %v1650_v16  ;;  %v1651_v27 = vld [vmem:[%s2435_s6 + $0x40] sm:$0xff] }
  0x18   :  { %1444 = vmatmul.msk.bf16.vlgmr.msra.gmra.mxu3 %vm271_vm2, %v255_v44 }
  0x1b   :  { %1108 = vmatpush.bf16.msrb.mxu2 %v1649_v30  ;;  %v1634_v30 = vld [vmem:[%s2431_s2 + $0x38] sm:$0xff] }
  0x23   :  { %1416 = vmatmul.msk.bf16.gmra.mxu0 %vm107_vm0, %v1616_v25 }
  0x24   :  { %1420 = vmatmul.msk.bf16.gmra.mxu1 %vm107_vm0, %v1616_v25  ;;  %v1658_v25 = vld [vmem:[%s2435_s6 + $0x78] sm:$0xff] }
  0x25   :  { %1196 = vmatpush.bf16.msrb.mxu3 %v1658_v25 }
  0x26   :  { %1429 = vmatmul.msk.bf16.gmra.mxu2 %vm271_vm2, %v256_v54 }
  0x28   :  { %1445 = vmatmul.msk.bf16.gmra.mxu3 %vm271_vm2, %v256_v54  ;;  %v1631_v54 = vld [vmem:[%s2431_s2 + $0x20] sm:$0xff] }
  0x33   :  { %1417 = vmatmul.msk.bf16.gmra.mxu0 %vm107_vm0, %v1617_v31 }
  0x34   :  { %1421 = vmatmul.msk.bf16.gmra.mxu1 %vm107_vm0, %v1617_v31  ;;  %v1657_v31 = vld [vmem:[%s2435_s6 + $0x70] sm:$0xff] }
  0x35   :  { %1197 = vmatpush.bf16.msrb.mxu3 %v1657_v31 }
  0x36   :  { %1430 = vmatmul.msk.bf16.gmra.mxu2 %vm271_vm2, %v257_v0 }
  0x38   :  { %1446 = vmatmul.msk.bf16.gmra.mxu3 %vm271_vm2, %v257_v0 }
  0x39   :  { %1198 = vmatpush.bf16.msrb.mxu3 %v1656_v39 }
  0x3d   :  { %1199 = vmatpush.bf16.msrb.mxu3 %v1655_v57 }
  0x43   :  { %1418 = vmatmul.msk.bf16.gmra.mxu0 %vm107_vm0, %v1618_v32 }
  0x44   :  { %1422 = vmatmul.msk.bf16.gmra.mxu1 %vm107_vm0, %v1618_v32  ;;  %v240_v32 = vld [vmem:[%s2429_s0 + $0xb0] sm:$0xff] }
  0x45   :  { %v261_v34 = vpack.c.bf16 %v241_v33, %v240_v32 }
  0x46   :  { %1431 = vmatmul.msk.bf16.gmra.mxu2 %vm271_vm2, %v258_v7 }
  0x48   :  { %1447 = vmatmul.msk.bf16.gmra.mxu3 %vm271_vm2, %v258_v7  ;;  %v1654_v7 = vld [vmem:[%s2435_s6 + $0x58] sm:$0xff] }
  0x49   :  { %1200 = vmatpush.bf16.msrb.mxu3 %v1654_v7 }
  0x53   :  { %1423 = vmatmul.msk.bf16.vlgmr.msrb.gmra.mxu0 %vm271_vm2, %v250_v35 }
  0x54   :  { %1439 = vmatmul.msk.bf16.vlgmr.msrb.gmra.mxu1 %vm271_vm2, %v250_v35 }
  0x56   :  { %1432 = vmatmul.msk.bf16.gmra.mxu2 %vm271_vm2, %v259_v18 }
  0x58   :  { %1448 = vmatmul.msk.bf16.gmra.mxu3 %vm271_vm2, %v259_v18 }
  0x63   :  { %1424 = vmatmul.msk.bf16.gmra.mxu0 %vm271_vm2, %v251_v38 }
  0x64   :  { %1440 = vmatmul.msk.bf16.gmra.mxu1 %vm271_vm2, %v251_v38  ;;  %v1648_v38 = vld [vmem:[%s2435_s6 + $0x28] sm:$0xff] }
  0x65   :  { %1109 = vmatpush.bf16.msrb.mxu2 %v1648_v38 }
  0x66   :  { %1433 = vmatmul.msk.bf16.gmra.mxu2 %vm271_vm2, %v260_v28 }
  0x68   :  { %1449 = vmatmul.msk.bf16.gmra.mxu3 %vm271_vm2, %v260_v28 }
  0x69   :  { %1110 = vmatpush.bf16.msrb.mxu2 %v1647_v56 }
  0x6d   :  { %1111 = vmatpush.bf16.msrb.mxu2 %v1646_v6 }
  0x73   :  { %1425 = vmatmul.msk.bf16.gmra.mxu0 %vm271_vm2, %v252_v41 }
  0x74   :  { %1441 = vmatmul.msk.bf16.gmra.mxu1 %vm271_vm2, %v252_v41  ;;  %v243_v41 = vld [vmem:[%s2429_s0 + $0xc8] sm:$0xff] }
  0x75   :  { %v262_v42 = vpack.c.bf16 %v243_v41, %v242_v40 }
  0x76   :  { %1434 = vmatmul.msk.bf16.gmra.mxu2 %vm271_vm2, %v261_v34 }
  0x78   :  { %1450 = vmatmul.msk.bf16.gmra.mxu3 %vm271_vm2, %v261_v34 }
  0x83   :  { %1426 = vmatmul.msk.bf16.gmra.mxu0 %vm271_vm2, %v253_v49 }
  0x84   :  { %1442 = vmatmul.msk.bf16.gmra.mxu1 %vm271_vm2, %v253_v49  ;;  %v245_v49 = vld [vmem:[%s2429_s0 + $0xd8] sm:$0xff] }
  0x86   :  { %1435 = vmatmul.msk.bf16.gmra.mxu2 %vm271_vm2, %v262_v42 }
  0x88   :  { %1451 = vmatmul.msk.bf16.gmra.mxu3 %vm271_vm2, %v262_v42  ;;  %v809_v42 = vld [vmem:[%s2434_s5] sm:$0x3] }
  0x90   :  { %v1840_v45 = vpop.f32.mrf.mxu0 }
  0x91   :  { %v1848_v48 = vpop.f32.mrf.mxu1 }
  0x93   :  { %1427 = vmatmul.msk.bf16.gmra.mxu0 %vm271_vm2, %v254_v59 }
  0x94   :  { %1443 = vmatmul.msk.bf16.gmra.mxu1 %vm271_vm2, %v254_v59 }
  0x98   :  { %v131_v50 = vpop.f32.mrf.mxu0 }
  0x99   :  { %v160_v51 = vpop.f32.mrf.mxu1  ;;  %v210_v22 = vpack.c.bf16 %v131_v50, %v1840_v45  ;;  %v1630_v45 = vld [vmem:[%s2431_s2 + $0x18] sm:$0xff]  ;;  %v1982_v53 = vpop.f32.mrf.mxu2 }
  0x9a   :  { %v211_v23 = vpack.c.bf16 %v160_v51, %v1848_v48  ;;  %v244_v48 = vld [vmem:[%s2429_s0 + $0xd0] sm:$0xff] }
  0x9b   :  { %v263_v50 = vpack.c.bf16 %v245_v49, %v244_v48  ;;  %v2113_v48 = vperm.slane %v809_v42, 0 }
  0x9d   :  { %1436 = vmatmul.msk.bf16.gmra.mxu2 %vm271_vm2, %v263_v50  ;;  %1452 = vmatmul.msk.bf16.gmra.mxu3 %vm271_vm2, %v263_v50  ;;  %v2116_v50 = vperm.slane %v809_v42, 1 }
  0xa0   :  { %v134_v55 = vpop.f32.mrf.mxu0 }
  0xa1   :  { %v163_v58 = vpop.f32.mrf.mxu1  ;;  %v2000_v59 = vpop.f32.mrf.mxu2 }
  0xa8   :  { %v136_v60 = vpop.f32.mrf.mxu0 }
  0xa9   :  { %v165_v61 = vpop.f32.mrf.mxu1  ;;  %v212_v20 = vpack.c.bf16 %v136_v60, %v134_v55  ;;  %v1987_v55 = vpop.f32.mrf.mxu3  ;;  %v247_v60 = vld [vmem:[%s2429_s0 + $0xe8] sm:$0xff] }
  0xaa   :  { %v213_v21 = vpack.c.bf16 %v165_v61, %v163_v58  ;;  %v246_v58 = vld [vmem:[%s2429_s0 + $0xe0] sm:$0xff] }
  0xab   :  { %v264_v62 = vpack.c.bf16 %v247_v60, %v246_v58 }
  0xad   :  { %1437 = vmatmul.msk.bf16.gmra.mxu2 %vm271_vm2, %v264_v62  ;;  %1453 = vmatmul.msk.bf16.gmra.mxu3 %vm271_vm2, %v264_v62 }
  0xb0   :  { %v139_v1 = vpop.f32.mrf.mxu0 }
  0xb1   :  { %v168_v2 = vpop.f32.mrf.mxu1  ;;  %v2009_v0 = vpop.f32.mrf.mxu3 }
  0xb8   :  { %v141_v3 = vpop.f32.mrf.mxu0 }
  0xb9   :  { %v170_v4 = vpop.f32.mrf.mxu1  ;;  %v214_v17 = vpack.c.bf16 %v141_v3, %v139_v1  ;;  %v2013_v1 = vpop.f32.mrf.mxu2 }
  0xba   :  { %v215_v19 = vpack.c.bf16 %v170_v4, %v168_v2  ;;  %v1632_v2 = vld [vmem:[%s2431_s2 + $0x28] sm:$0xff]  ;;  %v2018_v3 = vpop.f32.mrf.mxu3 }
  0xc0   :  { %v144_v8 = vpop.f32.mrf.mxu0 }
  0xc1   :  { %v173_v9 = vpop.f32.mrf.mxu1 }
  0xc8   :  { %v146_v10 = vpop.f32.mrf.mxu0 }
  0xc9   :  { %v216_v11 = vpack.c.bf16 %v146_v10, %v144_v8  ;;  %v175_v12 = vpop.f32.mrf.mxu1  ;;  %v248_v8 = vld [vmem:[%s2429_s0 + $0xf0] sm:$0xff]  ;;  %v2038_v10 = vpop.f32.mrf.mxu2 }
  0xca   :  { %v217_v13 = vpack.c.bf16 %v175_v12, %v173_v9  ;;  %v249_v9 = vld [vmem:[%s2429_s0 + $0xf8] sm:$0xff]  ;;  %v2040_v12 = vpop.f32.mrf.mxu3 }
  0xcb   :  { %635 = vmatpush.bf16.msra.mxu0 %v216_v11  ;;  %v265_v11 = vpack.c.bf16 %v249_v9, %v248_v8 }
  0xcc   :  { %724 = vmatpush.bf16.msra.mxu1 %v217_v13 }
  0xcd   :  { %1438 = vmatmul.msk.bf16.gmra.mxu2 %vm271_vm2, %v265_v11  ;;  %1454 = vmatmul.msk.bf16.gmra.mxu3 %vm271_vm2, %v265_v11 }
  0xcf   :  { %636 = vmatpush.bf16.msra.mxu0 %v214_v17 }
  0xd0   :  { %725 = vmatpush.bf16.msra.mxu1 %v215_v19  ;;  %v1934_v35 = vpop.f32.mrf.mxu0 }
  0xd1   :  { %v1939_v37 = vpop.f32.mrf.mxu1  ;;  %v2051_v16 = vpop.f32.mrf.mxu2 }
  0xd2   :  { %v2054_v17 = vpop.f32.mrf.mxu3 }
  0xd3   :  { %637 = vmatpush.bf16.msra.mxu0 %v212_v20  ;;  %v1645_v20 = vld [vmem:[%s2435_s6 + $0x10] sm:$0xff] }
  0xd4   :  { %726 = vmatpush.bf16.msra.mxu1 %v213_v21  ;;  %v1653_v21 = vld [vmem:[%s2435_s6 + $0x50] sm:$0xff]  ;;  %1112 = vmatpush.bf16.msrb.mxu2 %v1645_v20 }
  0xd5   :  { %1201 = vmatpush.bf16.msrb.mxu3 %v1653_v21 }
  0xd7   :  { %638 = vmatpush.bf16.msra.mxu0 %v210_v22  ;;  %v1644_v22 = vld [vmem:[%s2435_s6 + $0x8] sm:$0xff] }
  0xd8   :  { %727 = vmatpush.bf16.msra.mxu1 %v211_v23  ;;  %v1955_v43 = vpop.f32.mrf.mxu0  ;;  %v1652_v23 = vld [vmem:[%s2435_s6 + $0x48] sm:$0xff]  ;;  %1113 = vmatpush.bf16.msrb.mxu2 %v1644_v22 }
  0xd9   :  { %v1957_v44 = vpop.f32.mrf.mxu1  ;;  %1202 = vmatpush.bf16.msrb.mxu3 %v1652_v23 }
  0xda   :  { %1519 = vmatmul.msk.bf16.vlgmr.msra.gmra.mxu0 %vm107_vm0, %v1627_v24  ;;  %v2075_v25 = vpop.f32.mrf.mxu3 }
  0xdb   :  { %1535 = vmatmul.msk.bf16.vlgmr.msra.gmra.mxu1 %vm107_vm0, %v1627_v24  ;;  %v2073_v24 = vpop.f32.mrf.mxu2 }
  0xdc   :  { %1114 = vmatpush.bf16.msrb.mxu2 %v1643_v26 }
  0xdd   :  { %1203 = vmatpush.bf16.msrb.mxu3 %v1651_v27 }
  0xe0   :  { %v1964_v46 = vpop.f32.mrf.mxu0 }
  0xe1   :  { %v1967_v47 = vpop.f32.mrf.mxu1 }
  0xe2   :  { %v2094_v32 = vpop.f32.mrf.mxu3 }
  0xe3   :  { %v2092_v31 = vpop.f32.mrf.mxu2 }
  0xe8   :  { %v1978_v51 = vpop.f32.mrf.mxu0 }
  0xe9   :  { %v1980_v52 = vpop.f32.mrf.mxu1 }
  0xea   :  { %1520 = vmatmul.msk.bf16.gmra.mxu0 %vm107_vm0, %v1628_v29  ;;  %v2105_v41 = vpop.f32.mrf.mxu3 }
  0xeb   :  { %1536 = vmatmul.msk.bf16.gmra.mxu1 %vm107_vm0, %v1628_v29  ;;  %v2103_v39 = vpop.f32.mrf.mxu2 }
  0xf0   :  { %v2005_v61 = vpop.f32.mrf.mxu0 }
  0xf1   :  { %v2007_v63 = vpop.f32.mrf.mxu1 }
  0xf2   :  { %v2125_v6 = vpop.f32.mrf.mxu3 }
  0xf8   :  { %v2020_v4 = vpop.f32.mrf.mxu0 }
  0xf9   :  { %v2022_v5 = vpop.f32.mrf.mxu1 }
  0xfa   :  { %1521 = vmatmul.msk.bf16.gmra.mxu0 %vm107_vm0, %v1629_v36  ;;  %v2136_v26 = vpop.f32.mrf.mxu3 }
  0xfb   :  { %1537 = vmatmul.msk.bf16.gmra.mxu1 %vm107_vm0, %v1629_v36  ;;  %v1635_v36 = vld [vmem:[%s2431_s2 + $0x40] sm:$0xff] }
 0x100   :  { %v2042_v13 = vpop.f32.mrf.mxu0 }
 0x101   :  { %v2046_v14 = vpop.f32.mrf.mxu1 }
 0x108   :  { %v2057_v18 = vpop.f32.mrf.mxu0 }
 0x109   :  { %v2059_v19 = vpop.f32.mrf.mxu1 }
 0x10a   :  { %1522 = vmatmul.msk.bf16.gmra.mxu0 %vm107_vm0, %v1630_v45 }
 0x10b   :  { %1538 = vmatmul.msk.bf16.gmra.mxu1 %vm107_vm0, %v1630_v45 }
 0x110   :  { %v2083_v28 = vpop.f32.mrf.mxu0 }
 0x111   :  { %v2085_v29 = vpop.f32.mrf.mxu1 }
 0x118   :  { %v2096_v33 = vpop.f32.mrf.mxu0 }
 0x119   :  { %v2098_v34 = vpop.f32.mrf.mxu1 }
 0x11a   :  { %1523 = vmatmul.msk.bf16.gmra.mxu0 %vm107_vm0, %v1631_v54 }
 0x11b   :  { %1539 = vmatmul.msk.bf16.gmra.mxu1 %vm107_vm0, %v1631_v54 }
 0x12a   :  { %1524 = vmatmul.msk.bf16.gmra.mxu0 %vm107_vm0, %v1632_v2 }
 0x12b   :  { %1540 = vmatmul.msk.bf16.gmra.mxu1 %vm107_vm0, %v1632_v2  ;;  %v2122_v2 = vpop.f32.mrf.mxu2 }
 0x133   :  { %v2133_v22 = vpop.f32.mrf.mxu2 }
 0x13a   :  { %1525 = vmatmul.msk.bf16.gmra.mxu0 %vm107_vm0, %v1633_v15 }
 0x13b   :  { %1541 = vmatmul.msk.bf16.gmra.mxu1 %vm107_vm0, %v1633_v15 }
 0x14a   :  { %1526 = vmatmul.msk.bf16.gmra.mxu0 %vm107_vm0, %v1634_v30 }
 0x14b   :  { %1542 = vmatmul.msk.bf16.gmra.mxu1 %vm107_vm0, %v1634_v30 }
 0x157   :  { %v640_v38 = vpop.f32.mrf.mxu0 }
 0x158   :  { %v729_v40 = vpop.f32.mrf.mxu1  ;;  %v641_v45 = vadd.f32 %v640_v38, %v1934_v35 }
 0x159   :  { %v730_v49 = vadd.f32 %v729_v40, %v1939_v37 }
 0x15a   :  { %1527 = vmatmul.msk.bf16.gmra.mxu0 %vm107_vm0, %v1635_v36  ;;  %v815_v56 = vadd.f32 %v2113_v48, %v641_v45 }
 0x15b   :  { %1543 = vmatmul.msk.bf16.gmra.mxu1 %vm107_vm0, %v1635_v36  ;;  %v816_v60 = vadd.f32 %v2116_v50, %v730_v49 }
 0x15c   :  { %v879_v7 = vmax.f32 %v815_v56, 0.0 }
 0x15d   :  { %v880_v9 = vmax.f32 %v816_v60, 0.0  ;;  %v2145_v60 = vpop.f32.mrf.mxu2 }
 0x15f   :  { %v642_v54 = vpop.f32.mrf.mxu0 }
 0x160   :  { %v643_v57 = vadd.f32 %v642_v54, %v1955_v43  ;;  %v731_v58 = vpop.f32.mrf.mxu1  ;;  %v1636_v43 = vld [vmem:[%s2431_s2 + $0x48] sm:$0xff] }
 0x161   :  { %v732_v62 = vadd.f32 %v731_v58, %v1957_v44 }
 0x162   :  { %v817_v35 = vadd.f32 %v2113_v48, %v643_v57 }
 0x163   :  { %v818_v37 = vadd.f32 %v2116_v50, %v732_v62  ;;  %v2150_v62 = vpop.f32.mrf.mxu3 }
 0x164   :  { %v881_v8 = vmax.f32 %v817_v35, 0.0 }
 0x165   :  { %v882_v11 = vmax.f32 %v818_v37, 0.0 }
 0x166   :  { %v943_v15 = vpack.c.bf16 %v881_v8, %v879_v7 }
 0x167   :  { %v645_v20 = vpop.f32.mrf.mxu0  ;;  %v944_v21 = vpack.c.bf16 %v882_v11, %v880_v9  ;;  %v2156_v11 = vpop.f32.mrf.mxu2 }
 0x168   :  { %v734_v44 = vpop.f32.mrf.mxu1  ;;  %1115 = vmatmul.bf16.vlgmr.msrb.gmra.mxu2 %v943_v15  ;;  %v646_v23 = vadd.f32 %v645_v20, %v1964_v46 }
 0x169   :  { %1204 = vmatmul.bf16.vlgmr.msrb.gmra.mxu3 %v944_v21  ;;  %v735_v27 = vadd.f32 %v734_v44, %v1967_v47 }
 0x16a   :  { %1528 = vmatmul.msk.bf16.gmra.mxu0 %vm107_vm0, %v1636_v43  ;;  %v819_v36 = vadd.f32 %v2113_v48, %v646_v23 }
 0x16b   :  { %1544 = vmatmul.msk.bf16.gmra.mxu1 %vm107_vm0, %v1636_v43  ;;  %v820_v42 = vadd.f32 %v2116_v50, %v735_v27  ;;  %v2160_v21 = vpop.f32.mrf.mxu3 }
 0x16c   :  { %v883_v56 = vmax.f32 %v819_v36, 0.0 }
 0x16d   :  { %v884_v57 = vmax.f32 %v820_v42, 0.0 }
 0x16f   :  { %v647_v30 = vpop.f32.mrf.mxu0 }
 0x170   :  { %v648_v38 = vadd.f32 %v647_v30, %v1978_v51  ;;  %v736_v40 = vpop.f32.mrf.mxu1  ;;  %v1637_v51 = vld [vmem:[%s2431_s2 + $0x50] sm:$0xff] }
 0x171   :  { %v737_v45 = vadd.f32 %v736_v40, %v1980_v52 }
 0x172   :  { %v821_v49 = vadd.f32 %v2113_v48, %v648_v38 }
 0x173   :  { %v822_v54 = vadd.f32 %v2116_v50, %v737_v45 }
 0x174   :  { %v885_v46 = vmax.f32 %v821_v49, 0.0 }
 0x175   :  { %v886_v58 = vmax.f32 %v822_v54, 0.0  ;;  %v2169_v54 = vpop.f32.mrf.mxu2 }
 0x176   :  { %v945_v47 = vpack.c.bf16 %v885_v46, %v883_v56 }
 0x177   :  { %v650_v35 = vpop.f32.mrf.mxu0  ;;  %v946_v37 = vpack.c.bf16 %v886_v58, %v884_v57 }
 0x178   :  { %v739_v52 = vpop.f32.mrf.mxu1  ;;  %1120 = vmatmul.bf16.gmra.mxu2 %v945_v47  ;;  %v651_v7 = vadd.f32 %v650_v35, %v2005_v61 }
 0x179   :  { %1209 = vmatmul.bf16.gmra.mxu3 %v946_v37  ;;  %v740_v8 = vadd.f32 %v739_v52, %v2007_v63 }
 0x17a   :  { %1529 = vmatmul.msk.bf16.gmra.mxu0 %vm107_vm0, %v1637_v51  ;;  %v823_v15 = vadd.f32 %v2113_v48, %v651_v7 }
 0x17b   :  { %1545 = vmatmul.msk.bf16.gmra.mxu1 %vm107_vm0, %v1637_v51  ;;  %v824_v44 = vadd.f32 %v2116_v50, %v740_v8 }
 0x17c   :  { %v887_v30 = vmax.f32 %v823_v15, 0.0 }
 0x17d   :  { %v888_v36 = vmax.f32 %v824_v44, 0.0  ;;  %v2183_v8 = vpop.f32.mrf.mxu2 }
 0x17f   :  { %v652_v9 = vpop.f32.mrf.mxu0 }
 0x180   :  { %v653_v43 = vadd.f32 %v652_v9, %v2020_v4  ;;  %v741_v20 = vpop.f32.mrf.mxu1  ;;  %v1638_v4 = vld [vmem:[%s2431_s2 + $0x58] sm:$0xff] }
 0x181   :  { %v742_v23 = vadd.f32 %v741_v20, %v2022_v5  ;;  %v2172_v5 = vpop.f32.mrf.mxu3 }
 0x182   :  { %v825_v27 = vadd.f32 %v2113_v48, %v653_v43 }
 0x183   :  { %v826_v61 = vadd.f32 %v2116_v50, %v742_v23 }
 0x184   :  { %v889_v63 = vmax.f32 %v825_v27, 0.0 }
 0x185   :  { %v890_v38 = vmax.f32 %v826_v61, 0.0 }
 0x186   :  { %v947_v40 = vpack.c.bf16 %v889_v63, %v887_v30  ;;  %v2194_v30 = vpop.f32.mrf.mxu2 }
 0x187   :  { %v655_v42 = vpop.f32.mrf.mxu0  ;;  %v948_v45 = vpack.c.bf16 %v890_v38, %v888_v36 }
 0x188   :  { %v744_v49 = vpop.f32.mrf.mxu1  ;;  %1125 = vmatmul.bf16.gmra.mxu2 %v947_v40  ;;  %v656_v56 = vadd.f32 %v655_v42, %v2042_v13 }
 0x189   :  { %1214 = vmatmul.bf16.gmra.mxu3 %v948_v45  ;;  %v745_v46 = vadd.f32 %v744_v49, %v2046_v14  ;;  %v2185_v15 = vpop.f32.mrf.mxu3 }
 0x18a   :  { %1530 = vmatmul.msk.bf16.gmra.mxu0 %vm107_vm0, %v1638_v4  ;;  %v827_v58 = vadd.f32 %v2113_v48, %v656_v56 }
 0x18b   :  { %1546 = vmatmul.msk.bf16.gmra.mxu1 %vm107_vm0, %v1638_v4  ;;  %v828_v35 = vadd.f32 %v2116_v50, %v745_v46 }
 0x18c   :  { %v891_v9 = vmax.f32 %v827_v58, 0.0 }
 0x18d   :  { %v892_v14 = vmax.f32 %v828_v35, 0.0 }
 0x18e   :  { %v2207_v35 = vpop.f32.mrf.mxu2 }
 0x18f   :  { %v657_v57 = vpop.f32.mrf.mxu0 }
 0x190   :  { %v658_v47 = vadd.f32 %v657_v57, %v2057_v18  ;;  %v746_v51 = vpop.f32.mrf.mxu1  ;;  %v1639_v18 = vld [vmem:[%s2431_s2 + $0x60] sm:$0xff] }
 0x191   :  { %v747_v37 = vadd.f32 %v746_v51, %v2059_v19  ;;  %v2196_v63 = vpop.f32.mrf.mxu3 }
 0x192   :  { %v829_v52 = vadd.f32 %v2113_v48, %v658_v47  ;;  %v1640_v47 = vld [vmem:[%s2431_s2 + $0x68] sm:$0xff] }
 0x193   :  { %v830_v7 = vadd.f32 %v2116_v50, %v747_v37 }
 0x194   :  { %v893_v13 = vmax.f32 %v829_v52, 0.0 }
 0x195   :  { %v894_v43 = vmax.f32 %v830_v7, 0.0 }
 0x196   :  { %v949_v20 = vpack.c.bf16 %v893_v13, %v891_v9 }
 0x197   :  { %v660_v44 = vpop.f32.mrf.mxu0  ;;  %v950_v23 = vpack.c.bf16 %v894_v43, %v892_v14 }
 0x198   :  { %v749_v19 = vpop.f32.mrf.mxu1  ;;  %1130 = vmatmul.bf16.gmra.mxu2 %v949_v20  ;;  %v661_v27 = vadd.f32 %v660_v44, %v2083_v28  ;;  %v2219_v44 = vpop.f32.mrf.mxu2 }
 0x199   :  { %1219 = vmatmul.bf16.gmra.mxu3 %v950_v23  ;;  %v750_v61 = vadd.f32 %v749_v19, %v2085_v29 }
 0x19a   :  { %1531 = vmatmul.msk.bf16.gmra.mxu0 %vm107_vm0, %v1639_v18  ;;  %v831_v38 = vadd.f32 %v2113_v48, %v661_v27 }
 0x19b   :  { %1547 = vmatmul.msk.bf16.gmra.mxu1 %vm107_vm0, %v1639_v18  ;;  %v832_v42 = vadd.f32 %v2116_v50, %v750_v61 }
 0x19c   :  { %v895_v56 = vmax.f32 %v831_v38, 0.0 }
 0x19d   :  { %v896_v46 = vmax.f32 %v832_v42, 0.0 }
 0x19f   :  { %v662_v36 = vpop.f32.mrf.mxu0 }
 0x1a0   :  { %v663_v40 = vadd.f32 %v662_v36, %v2096_v33  ;;  %v751_v4 = vpop.f32.mrf.mxu1  ;;  %v2230_v42 = vpop.f32.mrf.mxu2 }
 0x1a1   :  { %v752_v45 = vadd.f32 %v751_v4, %v2098_v34  ;;  %v2209_v34 = vpop.f32.mrf.mxu3 }
 0x1a2   :  { %v833_v49 = vadd.f32 %v2113_v48, %v663_v40 }
 0x1a3   :  { %v834_v28 = vadd.f32 %v2116_v50, %v752_v45 }
 0x1a4   :  { %v897_v29 = vmax.f32 %v833_v49, 0.0 }
 0x1a5   :  { %v898_v57 = vmax.f32 %v834_v28, 0.0 }
 0x1a6   :  { %v951_v58 = vpack.c.bf16 %v897_v29, %v895_v56 }
 0x1a7   :  { %v665_v51 = vpop.f32.mrf.mxu0  ;;  %v952_v33 = vpack.c.bf16 %v898_v57, %v896_v46 }
 0x1a8   :  { %v754_v37 = vpop.f32.mrf.mxu1  ;;  %1135 = vmatmul.bf16.gmra.mxu2 %v951_v58  ;;  %v666_v52 = vadd.f32 %v665_v51, %v1982_v53 }
 0x1a9   :  { %1224 = vmatmul.bf16.gmra.mxu3 %v952_v33  ;;  %v755_v7 = vadd.f32 %v754_v37, %v1987_v55  ;;  %v2222_v19 = vpop.f32.mrf.mxu3 }
 0x1aa   :  { %1532 = vmatmul.msk.bf16.gmra.mxu0 %vm107_vm0, %v1640_v47  ;;  %v835_v13 = vadd.f32 %v2113_v48, %v666_v52 }
 0x1ab   :  { %1548 = vmatmul.msk.bf16.gmra.mxu1 %vm107_vm0, %v1640_v47  ;;  %v836_v20 = vadd.f32 %v2116_v50, %v755_v7 }
 0x1ac   :  { %v899_v27 = vmax.f32 %v835_v13, 0.0 }
 0x1ad   :  { %v900_v61 = vmax.f32 %v836_v20, 0.0 }
 0x1af   :  { %v667_v9 = vpop.f32.mrf.mxu0 }
 0x1b0   :  { %v668_v14 = vadd.f32 %v667_v9, %v2000_v59  ;;  %v756_v43 = vpop.f32.mrf.mxu1  ;;  %v1641_v59 = vld [vmem:[%s2431_s2 + $0x70] sm:$0xff]  ;;  %v2242_v9 = vpop.f32.mrf.mxu2 }
 0x1b1   :  { %v757_v18 = vadd.f32 %v756_v43, %v2009_v0  ;;  %v2233_v49 = vpop.f32.mrf.mxu3 }
 0x1b2   :  { %v837_v23 = vadd.f32 %v2113_v48, %v668_v14 }
 0x1b3   :  { %v838_v53 = vadd.f32 %v2116_v50, %v757_v18 }
 0x1b4   :  { %v901_v55 = vmax.f32 %v837_v23, 0.0 }
 0x1b5   :  { %v902_v36 = vmax.f32 %v838_v53, 0.0 }
 0x1b6   :  { %v953_v38 = vpack.c.bf16 %v901_v55, %v899_v27 }
 0x1b7   :  { %v670_v40 = vpop.f32.mrf.mxu0  ;;  %v954_v4 = vpack.c.bf16 %v902_v36, %v900_v61 }
 0x1b8   :  { %v759_v0 = vpop.f32.mrf.mxu1  ;;  %1140 = vmatmul.bf16.gmra.mxu2 %v953_v38  ;;  %v671_v45 = vadd.f32 %v670_v40, %v2013_v1  ;;  %v2253_v53 = vpop.f32.mrf.mxu2 }
 0x1b9   :  { %1229 = vmatmul.bf16.gmra.mxu3 %v954_v4  ;;  %v760_v28 = vadd.f32 %v759_v0, %v2018_v3  ;;  %v2247_v13 = vpop.f32.mrf.mxu3 }
 0x1ba   :  { %1533 = vmatmul.msk.bf16.gmra.mxu0 %vm107_vm0, %v1641_v59  ;;  %v839_v29 = vadd.f32 %v2113_v48, %v671_v45 }
 0x1bb   :  { %1549 = vmatmul.msk.bf16.gmra.mxu1 %vm107_vm0, %v1641_v59  ;;  %v840_v58 = vadd.f32 %v2116_v50, %v760_v28 }
 0x1bc   :  { %v903_v37 = vmax.f32 %v839_v29, 0.0 }
 0x1bd   :  { %v904_v52 = vmax.f32 %v840_v58, 0.0 }
 0x1bf   :  { %v672_v56 = vpop.f32.mrf.mxu0 }
 0x1c0   :  { %v673_v46 = vadd.f32 %v672_v56, %v2038_v10  ;;  %v761_v57 = vpop.f32.mrf.mxu1  ;;  %v1642_v10 = vld [vmem:[%s2431_s2 + $0x78] sm:$0xff] }
 0x1c1   :  { %v762_v47 = vadd.f32 %v761_v57, %v2040_v12  ;;  %v2257_v36 = vpop.f32.mrf.mxu3 }
 0x1c2   :  { %v841_v51 = vadd.f32 %v2113_v48, %v673_v46 }
 0x1c3   :  { %v842_v33 = vadd.f32 %v2116_v50, %v762_v47 }
 0x1c4   :  { %v905_v1 = vmax.f32 %v841_v51, 0.0 }
 0x1c5   :  { %v906_v7 = vmax.f32 %v842_v33, 0.0 }
 0x1c6   :  { %v955_v3 = vpack.c.bf16 %v905_v1, %v903_v37 }
 0x1c7   :  { %v675_v14 = vpop.f32.mrf.mxu0  ;;  %v956_v43 = vpack.c.bf16 %v906_v7, %v904_v52 }
 0x1c8   :  { %v764_v12 = vpop.f32.mrf.mxu1  ;;  %1145 = vmatmul.bf16.gmra.mxu2 %v955_v3  ;;  %v676_v20 = vadd.f32 %v675_v14, %v2051_v16 }
 0x1c9   :  { %1234 = vmatmul.bf16.gmra.mxu3 %v956_v43  ;;  %v765_v18 = vadd.f32 %v764_v12, %v2054_v17  ;;  %v2265_v57 = vpop.f32.mrf.mxu3 }
 0x1ca   :  { %1534 = vmatmul.msk.bf16.gmra.mxu0 %vm107_vm0, %v1642_v10  ;;  %v843_v27 = vadd.f32 %v2113_v48, %v676_v20 }
 0x1cb   :  { %1550 = vmatmul.msk.bf16.gmra.mxu1 %vm107_vm0, %v1642_v10  ;;  %v844_v38 = vadd.f32 %v2116_v50, %v765_v18 }
 0x1cc   :  { %v907_v4 = vmax.f32 %v843_v27, 0.0 }
 0x1cd   :  { %v908_v0 = vmax.f32 %v844_v38, 0.0 }
 0x1cf   :  { %v677_v23 = vpop.f32.mrf.mxu0 }
 0x1d0   :  { %v678_v55 = vadd.f32 %v677_v23, %v2073_v24  ;;  %v766_v61 = vpop.f32.mrf.mxu1  ;;  %v2263_v24 = vpop.f32.mrf.mxu2 }
 0x1d1   :  { %v767_v59 = vadd.f32 %v766_v61, %v2075_v25  ;;  %v2277_v43 = vpop.f32.mrf.mxu3 }
 0x1d2   :  { %v845_v40 = vadd.f32 %v2113_v48, %v678_v55 }
 0x1d3   :  { %v846_v16 = vadd.f32 %v2116_v50, %v767_v59 }
 0x1d4   :  { %v909_v17 = vmax.f32 %v845_v40, 0.0 }
 0x1d5   :  { %v910_v45 = vmax.f32 %v846_v16, 0.0 }
 0x1d6   :  { %v957_v28 = vpack.c.bf16 %v909_v17, %v907_v4 }
 0x1d7   :  { %v680_v56 = vpop.f32.mrf.mxu0  ;;  %v958_v29 = vpack.c.bf16 %v910_v45, %v908_v0 }
 0x1d8   :  { %v769_v46 = vpop.f32.mrf.mxu1  ;;  %1150 = vmatmul.bf16.gmra.mxu2 %v957_v28  ;;  %v681_v25 = vadd.f32 %v680_v56, %v2092_v31  ;;  %v2275_v10 = vpop.f32.mrf.mxu2 }
 0x1d9   :  { %1239 = vmatmul.bf16.gmra.mxu3 %v958_v29  ;;  %v770_v58 = vadd.f32 %v769_v46, %v2094_v32 }
 0x1da   :  { %v847_v51 = vadd.f32 %v2113_v48, %v681_v25 }
 0x1db   :  { %v848_v1 = vadd.f32 %v2116_v50, %v770_v58 }
 0x1dc   :  { %v911_v14 = vmax.f32 %v847_v51, 0.0 }
 0x1dd   :  { %v912_v32 = vmax.f32 %v848_v1, 0.0 }
 0x1df   :  { %v682_v47 = vpop.f32.mrf.mxu0 }
 0x1e0   :  { %v683_v33 = vadd.f32 %v682_v47, %v2103_v39  ;;  %v771_v37 = vpop.f32.mrf.mxu1 }
 0x1e1   :  { %v772_v52 = vadd.f32 %v771_v37, %v2105_v41  ;;  %v2282_v41 = vld [vmem:[%s2436_s7] ss:$0 sm:$0xff]  ;;  %s1691_s7 = smov [#allocation2]  }
 0x1e2   :  { %v849_v7 = vadd.f32 %v2113_v48, %v683_v33  ;;  %s1353_s25 = sshll.u32 %s1691_s7, 4  ;;  %s1354_s25 = int_to_ptr.vmem [resolvable:$true] %s1353_s25 }
 0x1e3   :  { %v850_v3 = vadd.f32 %v2116_v50, %v772_v52 }
 0x1e4   :  { %v913_v31 = vmax.f32 %v849_v7, 0.0 }
 0x1e5   :  { %v914_v12 = vmax.f32 %v850_v3, 0.0 }
 0x1e6   :  { %v959_v20 = vpack.c.bf16 %v913_v31, %v911_v14 }
 0x1e7   :  { %v685_v18 = vpop.f32.mrf.mxu0  ;;  %v960_v39 = vpack.c.bf16 %v914_v12, %v912_v32 }
 0x1e8   :  { %v774_v23 = vpop.f32.mrf.mxu1  ;;  %1155 = vmatmul.bf16.gmra.mxu2 %v959_v20  ;;  %v686_v55 = vadd.f32 %v685_v18, %v2122_v2 }
 0x1e9   :  { %1244 = vmatmul.bf16.gmra.mxu3 %v960_v39  ;;  %v775_v59 = vadd.f32 %v774_v23, %v2125_v6 }
 0x1ea   :  { %v851_v4 = vadd.f32 %v2113_v48, %v686_v55 }
 0x1eb   :  { %v1116_v27 = vpop.f32.mrf.mxu2  ;;  %v852_v45 = vadd.f32 %v2116_v50, %v775_v59 }
 0x1ec   :  { %v1117_v61 = vadd.f32 %v2282_v41, %v1116_v27  ;;  %v1205_v38 = vpop.f32.mrf.mxu3  ;;  %v915_v46 = vmax.f32 %v851_v4, 0.0 }
 0x1ed   :  { %v916_v47 = vmax.f32 %v852_v45, 0.0 }
 0x1ee   :  { %v2287_v40 = vadd.f32 %v1205_v38, %v1117_v61 }
 0x1ef   :  { %v687_v16 = vpop.f32.mrf.mxu0 }
 0x1f0   :  { %v688_v17 = vadd.f32 %v687_v16, %v2133_v22  ;;  %v776_v0 = vpop.f32.mrf.mxu1 }
 0x1f1   :  { %v777_v28 = vadd.f32 %v776_v0, %v2136_v26 }
 0x1f2   :  { %v853_v56 = vadd.f32 %v2113_v48, %v688_v17 }
 0x1f3   :  { %v854_v2 = vadd.f32 %v2116_v50, %v777_v28  ;;  %v1118_v29 = vpop.f32.mrf.mxu2 }
 0x1f4   :  { %v917_v25 = vmax.f32 %v853_v56, 0.0  ;;  %v1119_v6 = vadd.f32 %v2282_v41, %v1118_v29  ;;  %v1207_v58 = vpop.f32.mrf.mxu3 }
 0x1f5   :  { %v918_v51 = vmax.f32 %v854_v2, 0.0 }
 0x1f6   :  { %v2296_v33 = vadd.f32 %v1207_v58, %v1119_v6  ;;  %v961_v22 = vpack.c.bf16 %v917_v25, %v915_v46 }
 0x1f7   :  { %v690_v37 = vpop.f32.mrf.mxu0  ;;  %v962_v1 = vpack.c.bf16 %v918_v51, %v916_v47 }
 0x1f8   :  { %v779_v52 = vpop.f32.mrf.mxu1  ;;  %1160 = vmatmul.bf16.gmra.mxu2 %v961_v22  ;;  %v691_v7 = vadd.f32 %v690_v37, %v2145_v60 }
 0x1f9   :  { %1249 = vmatmul.bf16.gmra.mxu3 %v962_v1  ;;  %v780_v31 = vadd.f32 %v779_v52, %v2150_v62 }
 0x1fa   :  { %v855_v20 = vadd.f32 %v2113_v48, %v691_v7 }
 0x1fb   :  { %v1121_v26 = vpop.f32.mrf.mxu2  ;;  %v856_v23 = vadd.f32 %v2116_v50, %v780_v31 }
 0x1fc   :  { %v1122_v3 = vadd.f32 %v2282_v41, %v1121_v26  ;;  %v1210_v14 = vpop.f32.mrf.mxu3  ;;  %v919_v38 = vmax.f32 %v855_v20, 0.0 }
 0x1fd   :  { %v920_v4 = vmax.f32 %v856_v23, 0.0 }
 0x1fe   :  { %v2301_v32 = vadd.f32 %v1210_v14, %v1122_v3 }
 0x1ff   :  { %v692_v12 = vpop.f32.mrf.mxu0 }
 0x200   :  { %v693_v18 = vadd.f32 %v692_v12, %v2156_v11  ;;  %v781_v39 = vpop.f32.mrf.mxu1 }
 0x201   :  { %v782_v27 = vadd.f32 %v781_v39, %v2160_v21 }
 0x202   :  { %v857_v55 = vadd.f32 %v2113_v48, %v693_v18 }
 0x203   :  { %v858_v60 = vadd.f32 %v2116_v50, %v782_v27  ;;  %v1123_v61 = vpop.f32.mrf.mxu2 }
 0x204   :  { %v921_v59 = vmax.f32 %v857_v55, 0.0  ;;  %v1124_v62 = vadd.f32 %v2282_v41, %v1123_v61  ;;  %v1212_v16 = vpop.f32.mrf.mxu3 }
 0x205   :  { %v922_v17 = vmax.f32 %v858_v60, 0.0 }
 0x206   :  { %v2310_v0 = vadd.f32 %v1212_v16, %v1124_v62  ;;  %v963_v11 = vpack.c.bf16 %v921_v59, %v919_v38 }
 0x207   :  { %v695_v45 = vpop.f32.mrf.mxu0  ;;  %v964_v28 = vpack.c.bf16 %v922_v17, %v920_v4 }
 0x208   :  { %v784_v56 = vpop.f32.mrf.mxu1  ;;  %1165 = vmatmul.bf16.gmra.mxu2 %v963_v11  ;;  %v696_v2 = vadd.f32 %v695_v45, %v2169_v54 }
 0x209   :  { %1254 = vmatmul.bf16.gmra.mxu3 %v964_v28  ;;  %v785_v25 = vadd.f32 %v784_v56, %v2172_v5 }
 0x20a   :  { %v859_v47 = vadd.f32 %v2113_v48, %v696_v2 }
 0x20b   :  { %v1126_v21 = vpop.f32.mrf.mxu2  ;;  %v860_v37 = vadd.f32 %v2116_v50, %v785_v25 }
 0x20c   :  { %v1127_v29 = vadd.f32 %v2282_v41, %v1126_v21  ;;  %v1215_v46 = vpop.f32.mrf.mxu3  ;;  %v923_v7 = vmax.f32 %v859_v47, 0.0 }
 0x20d   :  { %v924_v31 = vmax.f32 %v860_v37, 0.0 }
 0x20e   :  { %v2315_v6 = vadd.f32 %v1215_v46, %v1127_v29 }
 0x20f   :  { %v697_v58 = vpop.f32.mrf.mxu0 }
 0x210   :  { %v698_v51 = vadd.f32 %v697_v58, %v2183_v8  ;;  %v786_v22 = vpop.f32.mrf.mxu1 }
 0x211   :  { %v787_v1 = vadd.f32 %v786_v22, %v2185_v15 }
 0x212   :  { %v861_v52 = vadd.f32 %v2113_v48, %v698_v51 }
 0x213   :  { %v862_v54 = vadd.f32 %v2116_v50, %v787_v1  ;;  %v1128_v26 = vpop.f32.mrf.mxu2 }
 0x214   :  { %v925_v3 = vmax.f32 %v861_v52, 0.0  ;;  %v1129_v5 = vadd.f32 %v2282_v41, %v1128_v26  ;;  %v1217_v14 = vpop.f32.mrf.mxu3 }
 0x215   :  { %v926_v12 = vmax.f32 %v862_v54, 0.0 }
 0x216   :  { %v2324_v20 = vadd.f32 %v1217_v14, %v1129_v5  ;;  %v965_v8 = vpack.c.bf16 %v925_v3, %v923_v7  ;;  %v1285_v7 = vmax.f32 %v2287_v40, 0.0 }
 0x217   :  { %v700_v18 = vpop.f32.mrf.mxu0  ;;  %v966_v39 = vpack.c.bf16 %v926_v12, %v924_v31 }
 0x218   :  { %v789_v23 = vpop.f32.mrf.mxu1  ;;  %1170 = vmatmul.bf16.gmra.mxu2 %v965_v8  ;;  %v701_v27 = vadd.f32 %v700_v18, %v2194_v30 }
 0x219   :  { %1259 = vmatmul.bf16.gmra.mxu3 %v966_v39  ;;  %v790_v61 = vadd.f32 %v789_v23, %v2196_v63 }
 0x21a   :  { %v863_v62 = vadd.f32 %v2113_v48, %v701_v27 }
 0x21b   :  { %v1131_v15 = vpop.f32.mrf.mxu2  ;;  %v864_v17 = vadd.f32 %v2116_v50, %v790_v61 }
 0x21c   :  { %v1132_v55 = vadd.f32 %v2282_v41, %v1131_v15  ;;  %v1220_v60 = vpop.f32.mrf.mxu3  ;;  %v927_v56 = vmax.f32 %v863_v62, 0.0 }
 0x21d   :  { %v928_v29 = vmax.f32 %v864_v17, 0.0 }
 0x21e   :  { %v2329_v38 = vadd.f32 %v1220_v60, %v1132_v55 }
 0x21f   :  { %v702_v59 = vpop.f32.mrf.mxu0 }
 0x220   :  { %v703_v16 = vadd.f32 %v702_v59, %v2207_v35  ;;  %v791_v4 = vpop.f32.mrf.mxu1 }
 0x221   :  { %v792_v11 = vadd.f32 %v791_v4, %v2209_v34 }
 0x222   :  { %v865_v45 = vadd.f32 %v2113_v48, %v703_v16 }
 0x223   :  { %v866_v30 = vadd.f32 %v2116_v50, %v792_v11  ;;  %v1133_v28 = vpop.f32.mrf.mxu2 }
 0x224   :  { %v929_v21 = vmax.f32 %v865_v45, 0.0  ;;  %v1134_v63 = vadd.f32 %v2282_v41, %v1133_v28  ;;  %v1222_v2 = vpop.f32.mrf.mxu3 }
 0x225   :  { %v930_v46 = vmax.f32 %v866_v30, 0.0 }
 0x226   :  { %v2338_v25 = vadd.f32 %v1222_v2, %v1134_v63  ;;  %v967_v35 = vpack.c.bf16 %v929_v21, %v927_v56  ;;  %v1287_v2 = vmax.f32 %v2301_v32, 0.0 }
 0x227   :  { %v705_v58 = vpop.f32.mrf.mxu0  ;;  %v968_v47 = vpack.c.bf16 %v930_v46, %v928_v29 }
 0x228   :  { %v794_v51 = vpop.f32.mrf.mxu1  ;;  %1175 = vmatmul.bf16.gmra.mxu2 %v967_v35  ;;  %v706_v22 = vadd.f32 %v705_v58, %v2219_v44 }
 0x229   :  { %1264 = vmatmul.bf16.gmra.mxu3 %v968_v47  ;;  %v795_v52 = vadd.f32 %v794_v51, %v2222_v19 }
 0x22a   :  { %v867_v3 = vadd.f32 %v2113_v48, %v706_v22 }
 0x22b   :  { %v1136_v34 = vpop.f32.mrf.mxu2  ;;  %v868_v12 = vadd.f32 %v2116_v50, %v795_v52 }
 0x22c   :  { %v1137_v37 = vadd.f32 %v2282_v41, %v1136_v34  ;;  %v1225_v1 = vpop.f32.mrf.mxu3  ;;  %v931_v23 = vmax.f32 %v867_v3, 0.0 }
 0x22d   :  { %v932_v55 = vmax.f32 %v868_v12, 0.0 }
 0x22e   :  { %v1226_v54 = vadd.f32 %v1225_v1, %v1137_v37 }
 0x22f   :  { %v707_v26 = vpop.f32.mrf.mxu0 }
 0x230   :  { %v1293_v5 = vmax.f32 %v1226_v54, 0.0  ;;  %v708_v14 = vadd.f32 %v707_v26, %v2230_v42  ;;  %v796_v31 = vpop.f32.mrf.mxu1 }
 0x231   :  { %v797_v8 = vadd.f32 %v796_v31, %v2233_v49  ;;  %v1286_v49 = vmax.f32 %v2296_v33, 0.0 }
 0x232   :  { %v2348_v44 = vmax.f32 %v1285_v7, %v1293_v5  ;;  %v869_v18 = vadd.f32 %v2113_v48, %v708_v14 }
 0x233   :  { %v870_v19 = vadd.f32 %v2116_v50, %v797_v8  ;;  %v1138_v39 = vpop.f32.mrf.mxu2 }
 0x234   :  { %v933_v15 = vmax.f32 %v869_v18, 0.0  ;;  %v1139_v40 = vadd.f32 %v2282_v41, %v1138_v39  ;;  %v1227_v27 = vpop.f32.mrf.mxu3 }
 0x235   :  { %v934_v60 = vmax.f32 %v870_v19, 0.0 }
 0x236   :  { %v1228_v42 = vadd.f32 %v1227_v27, %v1139_v40  ;;  %v969_v61 = vpack.c.bf16 %v933_v15, %v931_v23  ;;  %v1289_v40 = vmax.f32 %v2315_v6, 0.0 }
 0x237   :  { %v710_v59 = vpop.f32.mrf.mxu0  ;;  %v970_v62 = vpack.c.bf16 %v934_v60, %v932_v55 }
 0x238   :  { %v1294_v16 = vmax.f32 %v1228_v42, 0.0  ;;  %v799_v4 = vpop.f32.mrf.mxu1  ;;  %1180 = vmatmul.bf16.gmra.mxu2 %v969_v61  ;;  %v711_v45 = vadd.f32 %v710_v59, %v2242_v9 }
 0x239   :  { %1269 = vmatmul.bf16.gmra.mxu3 %v970_v62  ;;  %v800_v56 = vadd.f32 %v799_v4, %v2247_v13 }
 0x23a   :  { %v2354_v17 = vmax.f32 %v1286_v49, %v1294_v16  ;;  %v871_v33 = vadd.f32 %v2113_v48, %v711_v45 }
 0x23b   :  { %v1141_v11 = vpop.f32.mrf.mxu2  ;;  %v872_v58 = vadd.f32 %v2116_v50, %v800_v56  ;;  %v1290_v56 = vmax.f32 %v2324_v20, 0.0 }
 0x23c   :  { %v1142_v30 = vadd.f32 %v2282_v41, %v1141_v11  ;;  %v1230_v28 = vpop.f32.mrf.mxu3  ;;  %v935_v22 = vmax.f32 %v871_v33, 0.0  ;;  %v1291_v33 = vmax.f32 %v2329_v38, 0.0 }
 0x23d   :  { %v936_v52 = vmax.f32 %v872_v58, 0.0 }
 0x23e   :  { %v1231_v21 = vadd.f32 %v1230_v28, %v1142_v30 }
 0x23f   :  { %v712_v63 = vpop.f32.mrf.mxu0 }
 0x240   :  { %v1295_v29 = vmax.f32 %v1231_v21, 0.0  ;;  %v713_v46 = vadd.f32 %v712_v63, %v2253_v53  ;;  %v801_v35 = vpop.f32.mrf.mxu1 }
 0x241   :  { %v802_v47 = vadd.f32 %v801_v35, %v2257_v36  ;;  %v1288_v36 = vmax.f32 %v2310_v0, 0.0 }
 0x242   :  { %v2364_v9 = vmax.f32 %v1287_v2, %v1295_v29  ;;  %v873_v51 = vadd.f32 %v2113_v48, %v713_v46 }
 0x243   :  { %v874_v13 = vadd.f32 %v2116_v50, %v802_v47  ;;  %v1143_v34 = vpop.f32.mrf.mxu2 }
 0x244   :  { %v937_v37 = vmax.f32 %v873_v51, 0.0  ;;  %v1144_v32 = vadd.f32 %v2282_v41, %v1143_v34  ;;  %v1232_v1 = vpop.f32.mrf.mxu3  ;;  %v1292_v51 = vmax.f32 %v2338_v25, 0.0 }
 0x245   :  { %v938_v54 = vmax.f32 %v874_v13, 0.0 }
 0x246   :  { %v1233_v53 = vadd.f32 %v1232_v1, %v1144_v32  ;;  %v971_v26 = vpack.c.bf16 %v937_v37, %v935_v22 }
 0x247   :  { %v715_v7 = vpop.f32.mrf.mxu0  ;;  %v972_v3 = vpack.c.bf16 %v938_v54, %v936_v52 }
 0x248   :  { %v1296_v5 = vmax.f32 %v1233_v53, 0.0  ;;  %v804_v14 = vpop.f32.mrf.mxu1  ;;  %1185 = vmatmul.bf16.gmra.mxu2 %v971_v26  ;;  %v716_v8 = vadd.f32 %v715_v7, %v2263_v24 }
 0x249   :  { %1274 = vmatmul.bf16.gmra.mxu3 %v972_v3  ;;  %v805_v39 = vadd.f32 %v804_v14, %v2265_v57 }
 0x24a   :  { %v2370_v31 = vmax.f32 %v1288_v36, %v1296_v5  ;;  %v875_v0 = vadd.f32 %v2113_v48, %v716_v8 }
 0x24b   :  { %v1146_v12 = vpop.f32.mrf.mxu2  ;;  %v876_v42 = vadd.f32 %v2116_v50, %v805_v39 }
 0x24c   :  { %v1147_v18 = vadd.f32 %v2282_v41, %v1146_v12  ;;  %v1235_v19 = vpop.f32.mrf.mxu3  ;;  %v939_v49 = vmax.f32 %v875_v0, 0.0 }
 0x24d   :  { %v940_v11 = vmax.f32 %v876_v42, 0.0 }
 0x24e   :  { %v1236_v23 = vadd.f32 %v1235_v19, %v1147_v18 }
 0x24f   :  { %v717_v15 = vpop.f32.mrf.mxu0 }
 0x250   :  { %v1297_v27 = vmax.f32 %v1236_v23, 0.0  ;;  %v718_v55 = vadd.f32 %v717_v15, %v2275_v10  ;;  %v806_v60 = vpop.f32.mrf.mxu1 }
 0x251   :  { %v807_v61 = vadd.f32 %v806_v60, %v2277_v43 }
 0x252   :  { %v2380_v24 = vmax.f32 %v1289_v40, %v1297_v27  ;;  %v877_v59 = vadd.f32 %v2113_v48, %v718_v55 }
 0x253   :  { %v878_v57 = vadd.f32 %v2116_v50, %v807_v61  ;;  %v1148_v62 = vpop.f32.mrf.mxu2 }
 0x254   :  { %v941_v16 = vmax.f32 %v877_v59, 0.0  ;;  %v1149_v6 = vadd.f32 %v2282_v41, %v1148_v62  ;;  %v1237_v4 = vpop.f32.mrf.mxu3 }
 0x255   :  { %v942_v45 = vmax.f32 %v878_v57, 0.0 }
 0x256   :  { %v1238_v10 = vadd.f32 %v1237_v4, %v1149_v6  ;;  %v973_v30 = vpack.c.bf16 %v941_v16, %v939_v49 }
 0x257   :  { %v974_v28 = vpack.c.bf16 %v942_v45, %v940_v11 }
 0x258   :  { %v1298_v43 = vmax.f32 %v1238_v10, 0.0  ;;  %1190 = vmatmul.bf16.gmra.mxu2 %v973_v30 }
 0x259   :  { %1279 = vmatmul.bf16.gmra.mxu3 %v974_v28 }
 0x25a   :  { %v2386_v21 = vmax.f32 %v1290_v56, %v1298_v43 }
 0x25b   :  { %v1151_v48 = vpop.f32.mrf.mxu2 }
 0x25c   :  { %v1152_v50 = vadd.f32 %v2282_v41, %v1151_v48  ;;  %v1240_v63 = vpop.f32.mrf.mxu3 }
 0x25e   :  { %v1241_v2 = vadd.f32 %v1240_v63, %v1152_v50 }
 0x260   :  { %v1299_v29 = vmax.f32 %v1241_v2, 0.0 }
 0x262   :  { %v2390_v46 = vmax.f32 %v1291_v33, %v1299_v29 }
 0x263   :  { %v1153_v35 = vpop.f32.mrf.mxu2 }
 0x264   :  { %v1154_v58 = vadd.f32 %v2282_v41, %v1153_v35  ;;  %v1242_v47 = vpop.f32.mrf.mxu3 }
 0x266   :  { %v1243_v20 = vadd.f32 %v1242_v47, %v1154_v58 }
 0x268   :  { %v1300_v13 = vmax.f32 %v1243_v20, 0.0 }
 0x26a   :  { %v2394_v34 = vmax.f32 %v1292_v51, %v1300_v13 }
 0x26b   :  { %v1156_v22 = vpop.f32.mrf.mxu2 }
 0x26c   :  { %v1157_v37 = vadd.f32 %v2282_v41, %v1156_v22  ;;  %v1245_v32 = vpop.f32.mrf.mxu3 }
 0x26e   :  { %v1246_v1 = vadd.f32 %v1245_v32, %v1157_v37 }
 0x270   :  { %v1301_v11 = vmax.f32 %v1246_v1, 0.0 }
 0x273   :  { %v1158_v52 = vpop.f32.mrf.mxu2 }
 0x274   :  { %v1159_v38 = vadd.f32 %v2282_v41, %v1158_v52  ;;  %v1247_v54 = vpop.f32.mrf.mxu3 }
 0x276   :  { %v1248_v53 = vadd.f32 %v1247_v54, %v1159_v38 }
 0x278   :  { %v1302_v50 = vmax.f32 %v1248_v53, 0.0 }
 0x27b   :  { %v1161_v26 = vpop.f32.mrf.mxu2 }
 0x27c   :  { %v1162_v7 = vadd.f32 %v2282_v41, %v1161_v26  ;;  %v1250_v3 = vpop.f32.mrf.mxu3 }
 0x27e   :  { %v1251_v36 = vadd.f32 %v1250_v3, %v1162_v7 }
 0x280   :  { %v1303_v20 = vmax.f32 %v1251_v36, 0.0 }
 0x283   :  { %v1163_v5 = vpop.f32.mrf.mxu2 }
 0x284   :  { %v1164_v25 = vadd.f32 %v2282_v41, %v1163_v5  ;;  %v1252_v14 = vpop.f32.mrf.mxu3 }
 0x286   :  { %v1253_v12 = vadd.f32 %v1252_v14, %v1164_v25 }
 0x288   :  { %v1304_v52 = vmax.f32 %v1253_v12, 0.0 }
 0x28b   :  { %v1166_v8 = vpop.f32.mrf.mxu2 }
 0x28c   :  { %v1167_v18 = vadd.f32 %v2282_v41, %v1166_v8  ;;  %v1255_v19 = vpop.f32.mrf.mxu3 }
 0x28e   :  { %v1256_v39 = vadd.f32 %v1255_v19, %v1167_v18 }
 0x290   :  { %v1305_v36 = vmax.f32 %v1256_v39, 0.0 }
 0x293   :  { %v1168_v23 = vpop.f32.mrf.mxu2 }
 0x294   :  { %v1169_v15 = vadd.f32 %v2282_v41, %v1168_v23  ;;  %v1257_v40 = vpop.f32.mrf.mxu3 }
 0x296   :  { %v1258_v0 = vadd.f32 %v1257_v40, %v1169_v15 }
 0x298   :  { %v1306_v19 = vmax.f32 %v1258_v0, 0.0 }
 0x29b   :  { %v1171_v27 = vpop.f32.mrf.mxu2 }
 0x29c   :  { %v1172_v55 = vadd.f32 %v2282_v41, %v1171_v27  ;;  %v1260_v60 = vpop.f32.mrf.mxu3 }
 0x29e   :  { %v2403_v42 = vadd.f32 %v1260_v60, %v1172_v55 }
 0x2a0   :  { %v1307_v60 = vmax.f32 %v2403_v42, 0.0 }
 0x2a3   :  { %v1173_v61 = vpop.f32.mrf.mxu2 }
 0x2a4   :  { %v1174_v59 = vadd.f32 %v2282_v41, %v1173_v61  ;;  %v1262_v57 = vpop.f32.mrf.mxu3 }
 0x2a6   :  { %v2406_v62 = vadd.f32 %v1262_v57, %v1174_v59 }
 0x2ab   :  { %v1176_v49 = vpop.f32.mrf.mxu2 }
 0x2ac   :  { %v1177_v16 = vadd.f32 %v2282_v41, %v1176_v49  ;;  %v1265_v6 = vpop.f32.mrf.mxu3 }
 0x2ae   :  { %v1266_v4 = vadd.f32 %v1265_v6, %v1177_v16  ;;  %v1308_v6 = vmax.f32 %v2406_v62, 0.0 }
 0x2b0   :  { %v1309_v45 = vmax.f32 %v1266_v4, 0.0 }
 0x2b2   :  { %v1325_v10 = vmax.f32 %v1301_v11, %v1309_v45 }
 0x2b3   :  { %v1178_v30 = vpop.f32.mrf.mxu2 }
 0x2b4   :  { %v1333_v28 = vmax.f32 %v2348_v44, %v1325_v10  ;;  %v1179_v56 = vadd.f32 %v2282_v41, %v1178_v30  ;;  %v1267_v43 = vpop.f32.mrf.mxu3 }
 0x2b6   :  { %1341 = vst [vmem:[#allocation2] sm:$0xff] %v1333_v28  ;;  %v1268_v48 = vadd.f32 %v1267_v43, %v1179_v56 }
 0x2b8   :  { %v1310_v63 = vmax.f32 %v1268_v48, 0.0 }
 0x2ba   :  { %v1326_v2 = vmax.f32 %v1302_v50, %v1310_v63 }
 0x2bb   :  { %v1181_v33 = vpop.f32.mrf.mxu2 }
 0x2bc   :  { %v1334_v29 = vmax.f32 %v2354_v17, %v1326_v2  ;;  %v1182_v35 = vadd.f32 %v2282_v41, %v1181_v33  ;;  %v1270_v58 = vpop.f32.mrf.mxu3 }
 0x2be   :  { %1342 = vst [vmem:[#allocation2 + $0x8] sm:$0xff] %v1334_v29  ;;  %v1271_v47 = vadd.f32 %v1270_v58, %v1182_v35 }
 0x2c0   :  { %v1311_v51 = vmax.f32 %v1271_v47, 0.0 }
 0x2c2   :  { %v1327_v13 = vmax.f32 %v1303_v20, %v1311_v51 }
 0x2c3   :  { %v1183_v44 = vpop.f32.mrf.mxu2 }
 0x2c4   :  { %v1335_v22 = vmax.f32 %v2364_v9, %v1327_v13  ;;  %v1184_v37 = vadd.f32 %v2282_v41, %v1183_v44  ;;  %v1272_v32 = vpop.f32.mrf.mxu3 }
 0x2c6   :  { %1343 = vst [vmem:[#allocation2 + $0x10] sm:$0xff] %v1335_v22  ;;  %v1273_v1 = vadd.f32 %v1272_v32, %v1184_v37 }
 0x2c8   :  { %v1312_v38 = vmax.f32 %v1273_v1, 0.0 }
 0x2ca   :  { %v1328_v54 = vmax.f32 %v1304_v52, %v1312_v38 }
 0x2cb   :  { %v1186_v17 = vpop.f32.mrf.mxu2 }
 0x2cc   :  { %v1336_v53 = vmax.f32 %v2370_v31, %v1328_v54  ;;  %v1187_v26 = vadd.f32 %v2282_v41, %v1186_v17  ;;  %v1275_v7 = vpop.f32.mrf.mxu3 }
 0x2ce   :  { %1344 = vst [vmem:[#allocation2 + $0x18] sm:$0xff] %v1336_v53  ;;  %v1276_v3 = vadd.f32 %v1275_v7, %v1187_v26 }
 0x2d0   :  { %v1313_v5 = vmax.f32 %v1276_v3, 0.0 }
 0x2d2   :  { %v1329_v25 = vmax.f32 %v1305_v36, %v1313_v5 }
 0x2d3   :  { %v1188_v9 = vpop.f32.mrf.mxu2 }
 0x2d4   :  { %v1337_v14 = vmax.f32 %v2380_v24, %v1329_v25  ;;  %v1189_v8 = vadd.f32 %v2282_v41, %v1188_v9  ;;  %v1277_v18 = vpop.f32.mrf.mxu3 }
 0x2d6   :  { %1345 = vst [vmem:[#allocation2 + $0x20] sm:$0xff] %v1337_v14  ;;  %v1278_v12 = vadd.f32 %v1277_v18, %v1189_v8 }
 0x2d8   :  { %v1314_v23 = vmax.f32 %v1278_v12, 0.0 }
 0x2da   :  { %v1330_v15 = vmax.f32 %v1306_v19, %v1314_v23 }
 0x2db   :  { %v1191_v31 = vpop.f32.mrf.mxu2 }
 0x2dc   :  { %v1338_v40 = vmax.f32 %v2386_v21, %v1330_v15  ;;  %v1192_v27 = vadd.f32 %v2282_v41, %v1191_v31  ;;  %v1280_v55 = vpop.f32.mrf.mxu3 }
 0x2de   :  { %1346 = vst [vmem:[#allocation2 + $0x28] sm:$0xff] %v1338_v40  ;;  %v1281_v39 = vadd.f32 %v1280_v55, %v1192_v27 }
 0x2e0   :  { %v1315_v61 = vmax.f32 %v1281_v39, 0.0 }
 0x2e2   :  { %v1331_v24 = vmax.f32 %v1307_v60, %v1315_v61 }
 0x2e3   :  { %v1193_v59 = vpop.f32.mrf.mxu2 }
 0x2e4   :  { %v1339_v57 = vmax.f32 %v2390_v46, %v1331_v24  ;;  %v1194_v49 = vadd.f32 %v2282_v41, %v1193_v59  ;;  %v1282_v0 = vpop.f32.mrf.mxu3 }
 0x2e6   :  { %1347 = vst [vmem:[#allocation2 + $0x30] sm:$0xff] %v1339_v57  ;;  %v1283_v16 = vadd.f32 %v1282_v0, %v1194_v49 }
 0x2e8   :  { %v1316_v21 = vmax.f32 %v1283_v16, 0.0 }
 0x2ea   :  { %v1332_v42 = vmax.f32 %v1308_v6, %v1316_v21 }
 0x2ec   :  { %v1340_v4 = vmax.f32 %v2394_v34, %v1332_v42 }
 0x2ee   :  { %1348 = vst [vmem:[#allocation2 + $0x38] sm:$0xff] %v1340_v4 }
 0x2ef   :  { %1361 = dma.vmem_to_hbm [thread:$0]  %s1354_s25, 1024, %s1356_s1, [#allocation3], %s1692_s28, %s1692_s28, %s1693_s29  }
 0x2f0   :  { %1689 = dma.done.wait [#allocation3], 1024  }
 0x2f1   :  { %1690 = vsyncadd [#allocation3], 4294966272 }
 0x2f2   :  { %1366 = vsyncpa [#allocation3], 1 }

</bundles_post_ra>
